<compile_context>
chip_gen: v5e
topology: v5e:2x2
jax: 0.10.0
libtpu: 0.0.40
codegen_flags: <defaults>
</compile_context>

<pallas_src>
import functools

import jax
import jax.numpy as jnp
from jax.experimental import pallas as pl
from jax.experimental.pallas import tpu as pltpu


def _downscale_label_kernel(lab_ref, ph_ref, pw_ref, out_ref, s1_ref, cnt_ref, *,
                            n_classes, ignore_label, min_ratio, scale):
    # lab_ref: (1, tile_h, W)     native integer dtype
    # ph_ref : (tile_th, tile_h)  bf16 row-pooling matrix (grid-invariant)
    # pw_ref : (W, tw_pad)        bf16 col-pooling matrix (grid-invariant)
    # out_ref: (1, tile_th, tw_pad) int32
    # s1_ref : ((n_classes+1)*tile_th, W)      bf16 scratch (stage-1 slab)
    # cnt_ref: ((n_classes+1)*tile_th, tw_pad) f32  scratch (stage-2 counts)
    tile_th = out_ref.shape[1]
    tw_pad = out_ref.shape[2]
    n_cls1 = n_classes + 1

    lab = lab_ref[0]                       # (tile_h, W), stays at native width
    ph = ph_ref[...]                       # (tile_th, tile_h) bf16

    # Stage 1: per-class row pooling on the MXU (bf16 x bf16 -> f32, exact for
    # 0/1 data). Class c lands at slab rows [c*tile_th, (c+1)*tile_th).
    for cls in range(n_cls1):
        if cls == n_classes:
            # ignore_label pixels map to the extra class; a literal n_classes
            # label also one-hots to this class in the reference.
            hit = (lab == ignore_label) | (lab == cls)
        else:
            hit = lab == cls
        eq = hit.astype(jnp.bfloat16)                               # (tile_h, W)
        s1 = jnp.dot(ph, eq, preferred_element_type=jnp.float32)    # (tile_th, W)
        s1_ref[cls * tile_th:(cls + 1) * tile_th, :] = s1.astype(jnp.bfloat16)

    # Stage 2: ONE batched bf16 matmul over all classes -> exact integer window
    # counts (f32), streamed into the cnt scratch.
    cnt_ref[...] = jnp.dot(s1_ref[...], pw_ref[...],
                           preferred_element_type=jnp.float32)

    # Running max / argmax over the class dimension, slicing per class from the
    # cnt scratch so only ~3 (tile_th, tw_pad) values are live at once.
    # Strict '>' keeps the first maximal class (matches jnp.argmax / torch.max).
    best_cnt = cnt_ref[0:tile_th, :]
    best_cls = jnp.zeros((tile_th, tw_pad), dtype=jnp.int32)
    for cls in range(1, n_cls1):
        cnt = cnt_ref[cls * tile_th:(cls + 1) * tile_th, :]
        better = cnt > best_cnt
        best_cls = jnp.where(better, cls, best_cls)
        best_cnt = jnp.where(better, cnt, best_cnt)

    # min_ratio test on exact integer counts: cnt/s^2 < min_ratio <=> cnt < min_ratio*s^2.
    thresh = jnp.float32(min_ratio * scale * scale)
    out = jnp.where(best_cls == n_classes, ignore_label, best_cls)
    out = jnp.where(best_cnt < thresh, ignore_label, out)
    out_ref[0] = out.astype(jnp.int32)


def _pick_tile_trg_h(trg_h, valid_w, scale, itemsize, n_cls1, trg_w_pad, bs,
                     budget_bytes, cap=128):
    """Output rows per H-tile: multiple of 8 (or == trg_h), working set within
    budget_bytes, capped at 128, >= 2 total grid steps when bs == 1."""
    row_cost = (2 * scale * valid_w * itemsize     # double-buffered label rows
                + 2 * scale * valid_w * 2          # transient bf16 class masks
                + n_cls1 * valid_w * 2             # bf16 stage-1 slab rows
                + n_cls1 * trg_w_pad * 4)          # f32 stage-2 slab rows
    limit = max(8, min(cap, budget_bytes // max(1, row_cost)))
    if trg_h <= limit:
        if bs == 1 and trg_h >= 16 and trg_h % 16 == 0:
            return trg_h // 2      # >=2 H-steps so both v7x TensorCores get work
        return trg_h
    limit8 = max(8, (limit // 8) * 8)
    for t in range(limit8, 7, -8):  # prefer exact divisors (no host padding)
        if trg_h % t == 0:
            return t
    return limit8                   # non-divisor -> wrapper pads trg_h


def downscale_label(label, *, scale_factor=32, n_classes=19, ignore_label=255,
                    min_ratio=0.75, tile_trg_h=None, vmem_budget_bytes=24 << 20):
    """label: (bs, h, w) or (bs, 1, h, w) int array -> (bs, 1, h//s, w//s) int32."""
    s = int(scale_factor)
    assert s >= 1
    assert s <= 256, "bf16 stage-1 slab requires per-row window counts <= 256"
    assert ignore_label >= n_classes or ignore_label < 0, \
        "ignore_label must not collide with a valid class id"
    if label.ndim == 4:
        label = label[:, 0]
    assert label.ndim == 3
    if not jnp.issubdtype(label.dtype, jnp.integer):
        label = label.astype(jnp.int32)   # keep native width for integer labels

    bs, orig_h, orig_w = label.shape
    trg_h, trg_w = orig_h // s, orig_w // s
    assert trg_h >= 1 and trg_w >= 1
    n_cls1 = n_classes + 1

    # avg_pool2d drops trailing partial windows -> only the aligned region matters.
    valid_h, valid_w = trg_h * s, trg_w * s
    if (valid_h, valid_w) != (orig_h, orig_w):
        label = label[:, :valid_h, :valid_w]

    itemsize = label.dtype.itemsize
    trg_w_pad = ((trg_w + 127) // 128) * 128   # lane-dense output / stage-2 N dim

    # ---- H tiling (multiples of the pooling stride; blocks are independent) ----
    if tile_trg_h is None:
        tile = _pick_tile_trg_h(trg_h, valid_w, s, itemsize, n_cls1, trg_w_pad,
                                bs, vmem_budget_bytes)
    else:
        tile = int(tile_trg_h)
    tile = max(1, min(tile, trg_h))
    if tile < trg_h and tile % 8 != 0:
        tile = max(8, (tile // 8) * 8)
        if tile >= trg_h:
            tile = trg_h

    pad_trg_h = -(-trg_h // tile) * tile
    if pad_trg_h != trg_h:
        # Pad with ignore_label rows; the extra output rows are sliced off.
        pad_rows = pad_trg_h * s - valid_h
        label = jnp.pad(label, ((0, 0), (0, pad_rows), (0, 0)),
                        constant_values=ignore_label)
    n_h = pad_trg_h // tile
    tile_h = tile * s

    # ---- grid-invariant pooling matrices (built once on host, bf16) ----
    r = jnp.arange(tile, dtype=jnp.int32)[:, None]
    c = jnp.arange(tile_h, dtype=jnp.int32)[None, :]
    ph = (c // s == r).astype(jnp.bfloat16)                    # (tile, tile_h)
    j = jnp.arange(valid_w, dtype=jnp.int32)[:, None]
    i = jnp.arange(trg_w_pad, dtype=jnp.int32)[None, :]
    pw = (j // s == i).astype(jnp.bfloat16)                    # (valid_w, trg_w_pad), pad cols all-zero

    kernel = functools.partial(
        _downscale_label_kernel,
        n_classes=n_classes, ignore_label=ignore_label,
        min_ratio=min_ratio, scale=s)

    # ---- VMEM footprint -> vmem_limit (v7x-safe) ----
    in_blk = tile_h * valid_w * itemsize
    eq_blk = tile_h * valid_w * 2
    ph_b = tile * tile_h * 2
    pw_b = valid_w * trg_w_pad * 2
    out_blk = tile * trg_w_pad * 4
    s1_b = n_cls1 * tile * valid_w * 2
    cnt_b = n_cls1 * tile * trg_w_pad * 4
    footprint = 2 * (in_blk + ph_b + pw_b + out_blk) + 2 * eq_blk + s1_b + cnt_b
    vmem_limit = int(min(max(int(footprint * 1.4) + (2 << 20), 16 << 20), 56 << 20))

    flops = int(bs * n_h * 2 * n_cls1 * tile * valid_w * (tile_h + trg_w_pad))
    bytes_accessed = int(bs * (pad_trg_h * s * valid_w * itemsize
                               + pad_trg_h * trg_w_pad * 4)
                         + ph.size * 2 + pw.size * 2)

    out = pl.pallas_call(
        kernel,
        out_shape=jax.ShapeDtypeStruct((bs, pad_trg_h, trg_w_pad), jnp.int32),
        grid=(bs, n_h),
        in_specs=[
            pl.BlockSpec((1, tile_h, valid_w), lambda b, h: (b, h, 0)),
            pl.BlockSpec((tile, tile_h), lambda b, h: (0, 0)),
            pl.BlockSpec((valid_w, trg_w_pad), lambda b, h: (0, 0)),
        ],
        out_specs=pl.BlockSpec((1, tile, trg_w_pad), lambda b, h: (b, h, 0)),
        scratch_shapes=[
            pltpu.VMEM((n_cls1 * tile, valid_w), jnp.bfloat16),
            pltpu.VMEM((n_cls1 * tile, trg_w_pad), jnp.float32),
        ],
        compiler_params=pltpu.CompilerParams(
            dimension_semantics=("parallel", "parallel"),
            vmem_limit_bytes=vmem_limit),
        cost_estimate=pl.CostEstimate(
            flops=flops, transcendentals=0, bytes_accessed=bytes_accessed),
    )(label, ph, pw)

    out = out[:, :trg_h, :trg_w]          # drop lane / H padding
    return out[:, None, :, :]             # (bs, 1, trg_h, trg_w)


def _reference(label, *, scale_factor, n_classes, ignore_label, min_ratio):
    """Pure-JAX reference mirroring the PyTorch forward."""
    bs, h, w = label.shape
    s = scale_factor
    lab = jnp.where(label == ignore_label, n_classes, label)
    oh = jax.nn.one_hot(lab, n_classes + 1, dtype=jnp.float32)        # (bs,h,w,C)
    oh = oh[:, :h // s * s, :w // s * s, :]
    oh = oh.reshape(bs, h // s, s, w // s, s, n_classes + 1)
    pooled = oh.mean(axis=(2, 4))                                      # (bs,th,tw,C)
    max_ratio = pooled.max(axis=-1)
    cls = jnp.argmax(pooled, axis=-1).astype(jnp.int32)
    cls = jnp.where(cls == n_classes, ignore_label, cls)
    cls = jnp.where(max_ratio < min_ratio, ignore_label, cls)
    return cls[:, None, :, :]


if __name__ == "__main__":
    # Small deterministic example: bs=2, H=W=128, scale_factor=8 -> 16x16 output.
    bs, H, W = 2, 128, 128
    scale_factor, n_classes, ignore_label, min_ratio = 8, 19, 255, 0.75

    key = jax.random.PRNGKey(0)
    k1, k2, k3 = jax.random.split(key, 3)

    # Blockwise-constant label map + noise + ignore pixels so both the "keep
    # class" and "below min_ratio -> ignore" paths are exercised.
    rr = jnp.arange(H)[:, None] // 16
    cc = jnp.arange(W)[None, :] // 16
    base = jnp.broadcast_to(((rr + cc) % n_classes).astype(jnp.int32), (bs, H, W))
    noise = jax.random.randint(k1, (bs, H, W), 0, n_classes, dtype=jnp.int32)
    label = jnp.where(jax.random.uniform(k2, (bs, H, W)) < 0.15, noise, base)
    label = jnp.where(jax.random.uniform(k3, (bs, H, W)) < 0.05, ignore_label, label)

    ref = _reference(label, scale_factor=scale_factor, n_classes=n_classes,
                     ignore_label=ignore_label, min_ratio=min_ratio)

    # 1) Default path (auto tiling -> single H tile at this size).
    out1 = downscale_label(label, scale_factor=scale_factor, n_classes=n_classes,
                           ignore_label=ignore_label, min_ratio=min_ratio)
    out1 = jax.block_until_ready(out1)

    # 2) Forced multi-tile path (2 H-tiles of 8 output rows) exercises the tiled grid.
    out2 = downscale_label(label, scale_factor=scale_factor, n_classes=n_classes,
                           ignore_label=ignore_label, min_ratio=min_ratio,
                           tile_trg_h=8)
    out2 = jax.block_until_ready(out2)

    # 3) Native uint8 labels (no host upcast; kernel compares at native width).
    out3 = downscale_label(label.astype(jnp.uint8), scale_factor=scale_factor,
                           n_classes=n_classes, ignore_label=ignore_label,
                           min_ratio=min_ratio)
    out3 = jax.block_until_ready(out3)

    assert out1.shape == (bs, 1, H // scale_factor, W // scale_factor), out1.shape
    assert (out1 == ref).all(), "single-tile mismatch vs reference"
    assert (out2 == ref).all(), "multi-tile mismatch vs reference"
    assert (out3 == ref).all(), "uint8-label mismatch vs reference"

    print("KERNEL_OK")
</pallas_src>

<mosaic_0001>
module attributes {stable_mosaic.version = 11 : i64} {
  func.func @_downscale_label_kernel(%arg0: i32, %arg1: i32, %arg2: memref<1x128x128xi32, #tpu.memory_space<vmem>>, %arg3: memref<16x128xbf16, #tpu.memory_space<vmem>>, %arg4: memref<128x128xbf16, #tpu.memory_space<vmem>>, %arg5: memref<1x16x128xi32, #tpu.memory_space<vmem>>, %arg6: memref<320x128xbf16, #tpu.memory_space<vmem>>, %arg7: memref<320x128xf32, #tpu.memory_space<vmem>>) attributes {dimension_semantics = [#tpu.dimension_semantics<parallel>, #tpu.dimension_semantics<parallel>], iteration_bounds = array<i64: 2, 1>, scalar_prefetch = 0 : i64, scratch_operands = 2 : i64, tpu.core_type = #tpu.core_type<tc>, window_params = [{transform_indices = @transform_0, window_bounds = array<i64: 1, 128, 128>}, {pipeline_mode = #tpu.pipeline_mode<synchronous>, transform_indices = @transform_1, window_bounds = array<i64: 16, 128>}, {pipeline_mode = #tpu.pipeline_mode<synchronous>, transform_indices = @transform_2, window_bounds = array<i64: 128, 128>}, {transform_indices = @transform_3, window_bounds = array<i64: 1, 16, 128>}]} {
    %c0 = arith.constant 0 : index
    %c0_0 = arith.constant 0 : index
    %c0_1 = arith.constant 0 : index
    %0 = vector.load %arg2[%c0, %c0_0, %c0_1] : memref<1x128x128xi32, #tpu.memory_space<vmem>>, vector<1x128x128xi32>
    %1 = vector.shape_cast %0 : vector<1x128x128xi32> to vector<128x128xi32>
    %c0_2 = arith.constant 0 : index
    %c0_3 = arith.constant 0 : index
    %2 = vector.load %arg3[%c0_2, %c0_3] : memref<16x128xbf16, #tpu.memory_space<vmem>>, vector<16x128xbf16>
    %c0_i32 = arith.constant 0 : i32
    %3 = vector.broadcast %c0_i32 : i32 to vector<128x128xi32>
    %4 = arith.cmpi eq, %1, %3 : vector<128x128xi32>
    %5 = arith.extui %4 : vector<128x128xi1> to vector<128x128xi32>
    %6 = arith.sitofp %5 : vector<128x128xi32> to vector<128x128xf32>
    %7 = arith.truncf %6 : vector<128x128xf32> to vector<128x128xbf16>
    %cst = arith.constant dense<0.000000e+00> : vector<16x128xf32>
    %8 = tpu.matmul %2, %7, %cst {dimension_numbers = #tpu.dot_dimension_numbers<[1], [0], [0], [1], [0, 0, 1, 1], [], []>} : vector<16x128xbf16>, vector<128x128xbf16>, vector<16x128xf32> -> vector<16x128xf32>
    %9 = arith.truncf %8 : vector<16x128xf32> to vector<16x128xbf16>
    %c0_4 = arith.constant 0 : index
    %c0_5 = arith.constant 0 : index
    %10 = vector.load %arg6[%c0_4, %c0_5] : memref<320x128xbf16, #tpu.memory_space<vmem>>, vector<16x128xbf16>
    tpu.vector_store %arg6[%c0_4, %c0_5], %9 {strides = array<i32>} : memref<320x128xbf16, #tpu.memory_space<vmem>>, vector<16x128xbf16>,
    %c1_i32 = arith.constant 1 : i32
    %11 = vector.broadcast %c1_i32 : i32 to vector<128x128xi32>
    %12 = arith.cmpi eq, %1, %11 : vector<128x128xi32>
    %13 = arith.extui %12 : vector<128x128xi1> to vector<128x128xi32>
    %14 = arith.sitofp %13 : vector<128x128xi32> to vector<128x128xf32>
    %15 = arith.truncf %14 : vector<128x128xf32> to vector<128x128xbf16>
    %cst_6 = arith.constant dense<0.000000e+00> : vector<16x128xf32>
    %16 = tpu.matmul %2, %15, %cst_6 {dimension_numbers = #tpu.dot_dimension_numbers<[1], [0], [0], [1], [0, 0, 1, 1], [], []>} : vector<16x128xbf16>, vector<128x128xbf16>, vector<16x128xf32> -> vector<16x128xf32>
    %17 = arith.truncf %16 : vector<16x128xf32> to vector<16x128xbf16>
    %c16 = arith.constant 16 : index
    %c0_7 = arith.constant 0 : index
    %18 = vector.load %arg6[%c16, %c0_7] : memref<320x128xbf16, #tpu.memory_space<vmem>>, vector<16x128xbf16>
    tpu.vector_store %arg6[%c16, %c0_7], %17 {strides = array<i32>} : memref<320x128xbf16, #tpu.memory_space<vmem>>, vector<16x128xbf16>,
    %c2_i32 = arith.constant 2 : i32
    %19 = vector.broadcast %c2_i32 : i32 to vector<128x128xi32>
    %20 = arith.cmpi eq, %1, %19 : vector<128x128xi32>
    %21 = arith.extui %20 : vector<128x128xi1> to vector<128x128xi32>
    %22 = arith.sitofp %21 : vector<128x128xi32> to vector<128x128xf32>
    %23 = arith.truncf %22 : vector<128x128xf32> to vector<128x128xbf16>
    %cst_8 = arith.constant dense<0.000000e+00> : vector<16x128xf32>
    %24 = tpu.matmul %2, %23, %cst_8 {dimension_numbers = #tpu.dot_dimension_numbers<[1], [0], [0], [1], [0, 0, 1, 1], [], []>} : vector<16x128xbf16>, vector<128x128xbf16>, vector<16x128xf32> -> vector<16x128xf32>
    %25 = arith.truncf %24 : vector<16x128xf32> to vector<16x128xbf16>
    %c32 = arith.constant 32 : index
    %c0_9 = arith.constant 0 : index
    %26 = vector.load %arg6[%c32, %c0_9] : memref<320x128xbf16, #tpu.memory_space<vmem>>, vector<16x128xbf16>
    tpu.vector_store %arg6[%c32, %c0_9], %25 {strides = array<i32>} : memref<320x128xbf16, #tpu.memory_space<vmem>>, vector<16x128xbf16>,
    %c3_i32 = arith.constant 3 : i32
    %27 = vector.broadcast %c3_i32 : i32 to vector<128x128xi32>
    %28 = arith.cmpi eq, %1, %27 : vector<128x128xi32>
    %29 = arith.extui %28 : vector<128x128xi1> to vector<128x128xi32>
    %30 = arith.sitofp %29 : vector<128x128xi32> to vector<128x128xf32>
    %31 = arith.truncf %30 : vector<128x128xf32> to vector<128x128xbf16>
    %cst_10 = arith.constant dense<0.000000e+00> : vector<16x128xf32>
    %32 = tpu.matmul %2, %31, %cst_10 {dimension_numbers = #tpu.dot_dimension_numbers<[1], [0], [0], [1], [0, 0, 1, 1], [], []>} : vector<16x128xbf16>, vector<128x128xbf16>, vector<16x128xf32> -> vector<16x128xf32>
    %33 = arith.truncf %32 : vector<16x128xf32> to vector<16x128xbf16>
    %c48 = arith.constant 48 : index
    %c0_11 = arith.constant 0 : index
    %34 = vector.load %arg6[%c48, %c0_11] : memref<320x128xbf16, #tpu.memory_space<vmem>>, vector<16x128xbf16>
    tpu.vector_store %arg6[%c48, %c0_11], %33 {strides = array<i32>} : memref<320x128xbf16, #tpu.memory_space<vmem>>, vector<16x128xbf16>,
    %c4_i32 = arith.constant 4 : i32
    %35 = vector.broadcast %c4_i32 : i32 to vector<128x128xi32>
    %36 = arith.cmpi eq, %1, %35 : vector<128x128xi32>
    %37 = arith.extui %36 : vector<128x128xi1> to vector<128x128xi32>
    %38 = arith.sitofp %37 : vector<128x128xi32> to vector<128x128xf32>
    %39 = arith.truncf %38 : vector<128x128xf32> to vector<128x128xbf16>
    %cst_12 = arith.constant dense<0.000000e+00> : vector<16x128xf32>
    %40 = tpu.matmul %2, %39, %cst_12 {dimension_numbers = #tpu.dot_dimension_numbers<[1], [0], [0], [1], [0, 0, 1, 1], [], []>} : vector<16x128xbf16>, vector<128x128xbf16>, vector<16x128xf32> -> vector<16x128xf32>
    %41 = arith.truncf %40 : vector<16x128xf32> to vector<16x128xbf16>
    %c64 = arith.constant 64 : index
    %c0_13 = arith.constant 0 : index
    %42 = vector.load %arg6[%c64, %c0_13] : memref<320x128xbf16, #tpu.memory_space<vmem>>, vector<16x128xbf16>
    tpu.vector_store %arg6[%c64, %c0_13], %41 {strides = array<i32>} : memref<320x128xbf16, #tpu.memory_space<vmem>>, vector<16x128xbf16>,
    %c5_i32 = arith.constant 5 : i32
    %43 = vector.broadcast %c5_i32 : i32 to vector<128x128xi32>
    %44 = arith.cmpi eq, %1, %43 : vector<128x128xi32>
    %45 = arith.extui %44 : vector<128x128xi1> to vector<128x128xi32>
    %46 = arith.sitofp %45 : vector<128x128xi32> to vector<128x128xf32>
    %47 = arith.truncf %46 : vector<128x128xf32> to vector<128x128xbf16>
    %cst_14 = arith.constant dense<0.000000e+00> : vector<16x128xf32>
    %48 = tpu.matmul %2, %47, %cst_14 {dimension_numbers = #tpu.dot_dimension_numbers<[1], [0], [0], [1], [0, 0, 1, 1], [], []>} : vector<16x128xbf16>, vector<128x128xbf16>, vector<16x128xf32> -> vector<16x128xf32>
    %49 = arith.truncf %48 : vector<16x128xf32> to vector<16x128xbf16>
    %c80 = arith.constant 80 : index
    %c0_15 = arith.constant 0 : index
    %50 = vector.load %arg6[%c80, %c0_15] : memref<320x128xbf16, #tpu.memory_space<vmem>>, vector<16x128xbf16>
    tpu.vector_store %arg6[%c80, %c0_15], %49 {strides = array<i32>} : memref<320x128xbf16, #tpu.memory_space<vmem>>, vector<16x128xbf16>,
    %c6_i32 = arith.constant 6 : i32
    %51 = vector.broadcast %c6_i32 : i32 to vector<128x128xi32>
    %52 = arith.cmpi eq, %1, %51 : vector<128x128xi32>
    %53 = arith.extui %52 : vector<128x128xi1> to vector<128x128xi32>
    %54 = arith.sitofp %53 : vector<128x128xi32> to vector<128x128xf32>
    %55 = arith.truncf %54 : vector<128x128xf32> to vector<128x128xbf16>
    %cst_16 = arith.constant dense<0.000000e+00> : vector<16x128xf32>
    %56 = tpu.matmul %2, %55, %cst_16 {dimension_numbers = #tpu.dot_dimension_numbers<[1], [0], [0], [1], [0, 0, 1, 1], [], []>} : vector<16x128xbf16>, vector<128x128xbf16>, vector<16x128xf32> -> vector<16x128xf32>
    %57 = arith.truncf %56 : vector<16x128xf32> to vector<16x128xbf16>
    %c96 = arith.constant 96 : index
    %c0_17 = arith.constant 0 : index
    %58 = vector.load %arg6[%c96, %c0_17] : memref<320x128xbf16, #tpu.memory_space<vmem>>, vector<16x128xbf16>
    tpu.vector_store %arg6[%c96, %c0_17], %57 {strides = array<i32>} : memref<320x128xbf16, #tpu.memory_space<vmem>>, vector<16x128xbf16>,
    %c7_i32 = arith.constant 7 : i32
    %59 = vector.broadcast %c7_i32 : i32 to vector<128x128xi32>
    %60 = arith.cmpi eq, %1, %59 : vector<128x128xi32>
    %61 = arith.extui %60 : vector<128x128xi1> to vector<128x128xi32>
    %62 = arith.sitofp %61 : vector<128x128xi32> to vector<128x128xf32>
    %63 = arith.truncf %62 : vector<128x128xf32> to vector<128x128xbf16>
    %cst_18 = arith.constant dense<0.000000e+00> : vector<16x128xf32>
    %64 = tpu.matmul %2, %63, %cst_18 {dimension_numbers = #tpu.dot_dimension_numbers<[1], [0], [0], [1], [0, 0, 1, 1], [], []>} : vector<16x128xbf16>, vector<128x128xbf16>, vector<16x128xf32> -> vector<16x128xf32>
    %65 = arith.truncf %64 : vector<16x128xf32> to vector<16x128xbf16>
    %c112 = arith.constant 112 : index
    %c0_19 = arith.constant 0 : index
    %66 = vector.load %arg6[%c112, %c0_19] : memref<320x128xbf16, #tpu.memory_space<vmem>>, vector<16x128xbf16>
    tpu.vector_store %arg6[%c112, %c0_19], %65 {strides = array<i32>} : memref<320x128xbf16, #tpu.memory_space<vmem>>, vector<16x128xbf16>,
    %c8_i32 = arith.constant 8 : i32
    %67 = vector.broadcast %c8_i32 : i32 to vector<128x128xi32>
    %68 = arith.cmpi eq, %1, %67 : vector<128x128xi32>
    %69 = arith.extui %68 : vector<128x128xi1> to vector<128x128xi32>
    %70 = arith.sitofp %69 : vector<128x128xi32> to vector<128x128xf32>
    %71 = arith.truncf %70 : vector<128x128xf32> to vector<128x128xbf16>
    %cst_20 = arith.constant dense<0.000000e+00> : vector<16x128xf32>
    %72 = tpu.matmul %2, %71, %cst_20 {dimension_numbers = #tpu.dot_dimension_numbers<[1], [0], [0], [1], [0, 0, 1, 1], [], []>} : vector<16x128xbf16>, vector<128x128xbf16>, vector<16x128xf32> -> vector<16x128xf32>
    %73 = arith.truncf %72 : vector<16x128xf32> to vector<16x128xbf16>
    %c128 = arith.constant 128 : index
    %c0_21 = arith.constant 0 : index
    %74 = vector.load %arg6[%c128, %c0_21] : memref<320x128xbf16, #tpu.memory_space<vmem>>, vector<16x128xbf16>
    tpu.vector_store %arg6[%c128, %c0_21], %73 {strides = array<i32>} : memref<320x128xbf16, #tpu.memory_space<vmem>>, vector<16x128xbf16>,
    %c9_i32 = arith.constant 9 : i32
    %75 = vector.broadcast %c9_i32 : i32 to vector<128x128xi32>
    %76 = arith.cmpi eq, %1, %75 : vector<128x128xi32>
    %77 = arith.extui %76 : vector<128x128xi1> to vector<128x128xi32>
    %78 = arith.sitofp %77 : vector<128x128xi32> to vector<128x128xf32>
    %79 = arith.truncf %78 : vector<128x128xf32> to vector<128x128xbf16>
    %cst_22 = arith.constant dense<0.000000e+00> : vector<16x128xf32>
    %80 = tpu.matmul %2, %79, %cst_22 {dimension_numbers = #tpu.dot_dimension_numbers<[1], [0], [0], [1], [0, 0, 1, 1], [], []>} : vector<16x128xbf16>, vector<128x128xbf16>, vector<16x128xf32> -> vector<16x128xf32>
    %81 = arith.truncf %80 : vector<16x128xf32> to vector<16x128xbf16>
    %c144 = arith.constant 144 : index
    %c0_23 = arith.constant 0 : index
    %82 = vector.load %arg6[%c144, %c0_23] : memref<320x128xbf16, #tpu.memory_space<vmem>>, vector<16x128xbf16>
    tpu.vector_store %arg6[%c144, %c0_23], %81 {strides = array<i32>} : memref<320x128xbf16, #tpu.memory_space<vmem>>, vector<16x128xbf16>,
    %c10_i32 = arith.constant 10 : i32
    %83 = vector.broadcast %c10_i32 : i32 to vector<128x128xi32>
    %84 = arith.cmpi eq, %1, %83 : vector<128x128xi32>
    %85 = arith.extui %84 : vector<128x128xi1> to vector<128x128xi32>
    %86 = arith.sitofp %85 : vector<128x128xi32> to vector<128x128xf32>
    %87 = arith.truncf %86 : vector<128x128xf32> to vector<128x128xbf16>
    %cst_24 = arith.constant dense<0.000000e+00> : vector<16x128xf32>
    %88 = tpu.matmul %2, %87, %cst_24 {dimension_numbers = #tpu.dot_dimension_numbers<[1], [0], [0], [1], [0, 0, 1, 1], [], []>} : vector<16x128xbf16>, vector<128x128xbf16>, vector<16x128xf32> -> vector<16x128xf32>
    %89 = arith.truncf %88 : vector<16x128xf32> to vector<16x128xbf16>
    %c160 = arith.constant 160 : index
    %c0_25 = arith.constant 0 : index
    %90 = vector.load %arg6[%c160, %c0_25] : memref<320x128xbf16, #tpu.memory_space<vmem>>, vector<16x128xbf16>
    tpu.vector_store %arg6[%c160, %c0_25], %89 {strides = array<i32>} : memref<320x128xbf16, #tpu.memory_space<vmem>>, vector<16x128xbf16>,
    %c11_i32 = arith.constant 11 : i32
    %91 = vector.broadcast %c11_i32 : i32 to vector<128x128xi32>
    %92 = arith.cmpi eq, %1, %91 : vector<128x128xi32>
    %93 = arith.extui %92 : vector<128x128xi1> to vector<128x128xi32>
    %94 = arith.sitofp %93 : vector<128x128xi32> to vector<128x128xf32>
    %95 = arith.truncf %94 : vector<128x128xf32> to vector<128x128xbf16>
    %cst_26 = arith.constant dense<0.000000e+00> : vector<16x128xf32>
    %96 = tpu.matmul %2, %95, %cst_26 {dimension_numbers = #tpu.dot_dimension_numbers<[1], [0], [0], [1], [0, 0, 1, 1], [], []>} : vector<16x128xbf16>, vector<128x128xbf16>, vector<16x128xf32> -> vector<16x128xf32>
    %97 = arith.truncf %96 : vector<16x128xf32> to vector<16x128xbf16>
    %c176 = arith.constant 176 : index
    %c0_27 = arith.constant 0 : index
    %98 = vector.load %arg6[%c176, %c0_27] : memref<320x128xbf16, #tpu.memory_space<vmem>>, vector<16x128xbf16>
    tpu.vector_store %arg6[%c176, %c0_27], %97 {strides = array<i32>} : memref<320x128xbf16, #tpu.memory_space<vmem>>, vector<16x128xbf16>,
    %c12_i32 = arith.constant 12 : i32
    %99 = vector.broadcast %c12_i32 : i32 to vector<128x128xi32>
    %100 = arith.cmpi eq, %1, %99 : vector<128x128xi32>
    %101 = arith.extui %100 : vector<128x128xi1> to vector<128x128xi32>
    %102 = arith.sitofp %101 : vector<128x128xi32> to vector<128x128xf32>
    %103 = arith.truncf %102 : vector<128x128xf32> to vector<128x128xbf16>
    %cst_28 = arith.constant dense<0.000000e+00> : vector<16x128xf32>
    %104 = tpu.matmul %2, %103, %cst_28 {dimension_numbers = #tpu.dot_dimension_numbers<[1], [0], [0], [1], [0, 0, 1, 1], [], []>} : vector<16x128xbf16>, vector<128x128xbf16>, vector<16x128xf32> -> vector<16x128xf32>
    %105 = arith.truncf %104 : vector<16x128xf32> to vector<16x128xbf16>
    %c192 = arith.constant 192 : index
    %c0_29 = arith.constant 0 : index
    %106 = vector.load %arg6[%c192, %c0_29] : memref<320x128xbf16, #tpu.memory_space<vmem>>, vector<16x128xbf16>
    tpu.vector_store %arg6[%c192, %c0_29], %105 {strides = array<i32>} : memref<320x128xbf16, #tpu.memory_space<vmem>>, vector<16x128xbf16>,
    %c13_i32 = arith.constant 13 : i32
    %107 = vector.broadcast %c13_i32 : i32 to vector<128x128xi32>
    %108 = arith.cmpi eq, %1, %107 : vector<128x128xi32>
    %109 = arith.extui %108 : vector<128x128xi1> to vector<128x128xi32>
    %110 = arith.sitofp %109 : vector<128x128xi32> to vector<128x128xf32>
    %111 = arith.truncf %110 : vector<128x128xf32> to vector<128x128xbf16>
    %cst_30 = arith.constant dense<0.000000e+00> : vector<16x128xf32>
    %112 = tpu.matmul %2, %111, %cst_30 {dimension_numbers = #tpu.dot_dimension_numbers<[1], [0], [0], [1], [0, 0, 1, 1], [], []>} : vector<16x128xbf16>, vector<128x128xbf16>, vector<16x128xf32> -> vector<16x128xf32>
    %113 = arith.truncf %112 : vector<16x128xf32> to vector<16x128xbf16>
    %c208 = arith.constant 208 : index
    %c0_31 = arith.constant 0 : index
    %114 = vector.load %arg6[%c208, %c0_31] : memref<320x128xbf16, #tpu.memory_space<vmem>>, vector<16x128xbf16>
    tpu.vector_store %arg6[%c208, %c0_31], %113 {strides = array<i32>} : memref<320x128xbf16, #tpu.memory_space<vmem>>, vector<16x128xbf16>,
    %c14_i32 = arith.constant 14 : i32
    %115 = vector.broadcast %c14_i32 : i32 to vector<128x128xi32>
    %116 = arith.cmpi eq, %1, %115 : vector<128x128xi32>
    %117 = arith.extui %116 : vector<128x128xi1> to vector<128x128xi32>
    %118 = arith.sitofp %117 : vector<128x128xi32> to vector<128x128xf32>
    %119 = arith.truncf %118 : vector<128x128xf32> to vector<128x128xbf16>
    %cst_32 = arith.constant dense<0.000000e+00> : vector<16x128xf32>
    %120 = tpu.matmul %2, %119, %cst_32 {dimension_numbers = #tpu.dot_dimension_numbers<[1], [0], [0], [1], [0, 0, 1, 1], [], []>} : vector<16x128xbf16>, vector<128x128xbf16>, vector<16x128xf32> -> vector<16x128xf32>
    %121 = arith.truncf %120 : vector<16x128xf32> to vector<16x128xbf16>
    %c224 = arith.constant 224 : index
    %c0_33 = arith.constant 0 : index
    %122 = vector.load %arg6[%c224, %c0_33] : memref<320x128xbf16, #tpu.memory_space<vmem>>, vector<16x128xbf16>
    tpu.vector_store %arg6[%c224, %c0_33], %121 {strides = array<i32>} : memref<320x128xbf16, #tpu.memory_space<vmem>>, vector<16x128xbf16>,
    %c15_i32 = arith.constant 15 : i32
    %123 = vector.broadcast %c15_i32 : i32 to vector<128x128xi32>
    %124 = arith.cmpi eq, %1, %123 : vector<128x128xi32>
    %125 = arith.extui %124 : vector<128x128xi1> to vector<128x128xi32>
    %126 = arith.sitofp %125 : vector<128x128xi32> to vector<128x128xf32>
    %127 = arith.truncf %126 : vector<128x128xf32> to vector<128x128xbf16>
    %cst_34 = arith.constant dense<0.000000e+00> : vector<16x128xf32>
    %128 = tpu.matmul %2, %127, %cst_34 {dimension_numbers = #tpu.dot_dimension_numbers<[1], [0], [0], [1], [0, 0, 1, 1], [], []>} : vector<16x128xbf16>, vector<128x128xbf16>, vector<16x128xf32> -> vector<16x128xf32>
    %129 = arith.truncf %128 : vector<16x128xf32> to vector<16x128xbf16>
    %c240 = arith.constant 240 : index
    %c0_35 = arith.constant 0 : index
    %130 = vector.load %arg6[%c240, %c0_35] : memref<320x128xbf16, #tpu.memory_space<vmem>>, vector<16x128xbf16>
    tpu.vector_store %arg6[%c240, %c0_35], %129 {strides = array<i32>} : memref<320x128xbf16, #tpu.memory_space<vmem>>, vector<16x128xbf16>,
    %c16_i32 = arith.constant 16 : i32
    %131 = vector.broadcast %c16_i32 : i32 to vector<128x128xi32>
    %132 = arith.cmpi eq, %1, %131 : vector<128x128xi32>
    %133 = arith.extui %132 : vector<128x128xi1> to vector<128x128xi32>
    %134 = arith.sitofp %133 : vector<128x128xi32> to vector<128x128xf32>
    %135 = arith.truncf %134 : vector<128x128xf32> to vector<128x128xbf16>
    %cst_36 = arith.constant dense<0.000000e+00> : vector<16x128xf32>
    %136 = tpu.matmul %2, %135, %cst_36 {dimension_numbers = #tpu.dot_dimension_numbers<[1], [0], [0], [1], [0, 0, 1, 1], [], []>} : vector<16x128xbf16>, vector<128x128xbf16>, vector<16x128xf32> -> vector<16x128xf32>
    %137 = arith.truncf %136 : vector<16x128xf32> to vector<16x128xbf16>
    %c256 = arith.constant 256 : index
    %c0_37 = arith.constant 0 : index
    %138 = vector.load %arg6[%c256, %c0_37] : memref<320x128xbf16, #tpu.memory_space<vmem>>, vector<16x128xbf16>
    tpu.vector_store %arg6[%c256, %c0_37], %137 {strides = array<i32>} : memref<320x128xbf16, #tpu.memory_space<vmem>>, vector<16x128xbf16>,
    %c17_i32 = arith.constant 17 : i32
    %139 = vector.broadcast %c17_i32 : i32 to vector<128x128xi32>
    %140 = arith.cmpi eq, %1, %139 : vector<128x128xi32>
    %141 = arith.extui %140 : vector<128x128xi1> to vector<128x128xi32>
    %142 = arith.sitofp %141 : vector<128x128xi32> to vector<128x128xf32>
    %143 = arith.truncf %142 : vector<128x128xf32> to vector<128x128xbf16>
    %cst_38 = arith.constant dense<0.000000e+00> : vector<16x128xf32>
    %144 = tpu.matmul %2, %143, %cst_38 {dimension_numbers = #tpu.dot_dimension_numbers<[1], [0], [0], [1], [0, 0, 1, 1], [], []>} : vector<16x128xbf16>, vector<128x128xbf16>, vector<16x128xf32> -> vector<16x128xf32>
    %145 = arith.truncf %144 : vector<16x128xf32> to vector<16x128xbf16>
    %c272 = arith.constant 272 : index
    %c0_39 = arith.constant 0 : index
    %146 = vector.load %arg6[%c272, %c0_39] : memref<320x128xbf16, #tpu.memory_space<vmem>>, vector<16x128xbf16>
    tpu.vector_store %arg6[%c272, %c0_39], %145 {strides = array<i32>} : memref<320x128xbf16, #tpu.memory_space<vmem>>, vector<16x128xbf16>,
    %c18_i32 = arith.constant 18 : i32
    %147 = vector.broadcast %c18_i32 : i32 to vector<128x128xi32>
    %148 = arith.cmpi eq, %1, %147 : vector<128x128xi32>
    %149 = arith.extui %148 : vector<128x128xi1> to vector<128x128xi32>
    %150 = arith.sitofp %149 : vector<128x128xi32> to vector<128x128xf32>
    %151 = arith.truncf %150 : vector<128x128xf32> to vector<128x128xbf16>
    %cst_40 = arith.constant dense<0.000000e+00> : vector<16x128xf32>
    %152 = tpu.matmul %2, %151, %cst_40 {dimension_numbers = #tpu.dot_dimension_numbers<[1], [0], [0], [1], [0, 0, 1, 1], [], []>} : vector<16x128xbf16>, vector<128x128xbf16>, vector<16x128xf32> -> vector<16x128xf32>
    %153 = arith.truncf %152 : vector<16x128xf32> to vector<16x128xbf16>
    %c288 = arith.constant 288 : index
    %c0_41 = arith.constant 0 : index
    %154 = vector.load %arg6[%c288, %c0_41] : memref<320x128xbf16, #tpu.memory_space<vmem>>, vector<16x128xbf16>
    tpu.vector_store %arg6[%c288, %c0_41], %153 {strides = array<i32>} : memref<320x128xbf16, #tpu.memory_space<vmem>>, vector<16x128xbf16>,
    %c255_i32 = arith.constant 255 : i32
    %155 = vector.broadcast %c255_i32 : i32 to vector<128x128xi32>
    %156 = arith.cmpi eq, %1, %155 : vector<128x128xi32>
    %c19_i32 = arith.constant 19 : i32
    %157 = vector.broadcast %c19_i32 : i32 to vector<128x128xi32>
    %158 = arith.cmpi eq, %1, %157 : vector<128x128xi32>
    %159 = arith.ori %156, %158 : vector<128x128xi1>
    %160 = arith.extui %159 : vector<128x128xi1> to vector<128x128xi32>
    %161 = arith.sitofp %160 : vector<128x128xi32> to vector<128x128xf32>
    %162 = arith.truncf %161 : vector<128x128xf32> to vector<128x128xbf16>
    %cst_42 = arith.constant dense<0.000000e+00> : vector<16x128xf32>
    %163 = tpu.matmul %2, %162, %cst_42 {dimension_numbers = #tpu.dot_dimension_numbers<[1], [0], [0], [1], [0, 0, 1, 1], [], []>} : vector<16x128xbf16>, vector<128x128xbf16>, vector<16x128xf32> -> vector<16x128xf32>
    %164 = arith.truncf %163 : vector<16x128xf32> to vector<16x128xbf16>
    %c304 = arith.constant 304 : index
    %c0_43 = arith.constant 0 : index
    %165 = vector.load %arg6[%c304, %c0_43] : memref<320x128xbf16, #tpu.memory_space<vmem>>, vector<16x128xbf16>
    tpu.vector_store %arg6[%c304, %c0_43], %164 {strides = array<i32>} : memref<320x128xbf16, #tpu.memory_space<vmem>>, vector<16x128xbf16>,
    %c0_44 = arith.constant 0 : index
    %c0_45 = arith.constant 0 : index
    %166 = vector.load %arg6[%c0_44, %c0_45] : memref<320x128xbf16, #tpu.memory_space<vmem>>, vector<320x128xbf16>
    %c0_46 = arith.constant 0 : index
    %c0_47 = arith.constant 0 : index
    %167 = vector.load %arg4[%c0_46, %c0_47] : memref<128x128xbf16, #tpu.memory_space<vmem>>, vector<128x128xbf16>
    %cst_48 = arith.constant dense<0.000000e+00> : vector<320x128xf32>
    %168 = tpu.matmul %166, %167, %cst_48 {dimension_numbers = #tpu.dot_dimension_numbers<[1], [0], [0], [1], [0, 0, 1, 1], [], []>} : vector<320x128xbf16>, vector<128x128xbf16>, vector<320x128xf32> -> vector<320x128xf32>
    %c0_49 = arith.constant 0 : index
    %c0_50 = arith.constant 0 : index
    %169 = vector.load %arg7[%c0_49, %c0_50] : memref<320x128xf32, #tpu.memory_space<vmem>>, vector<320x128xf32>
    tpu.vector_store %arg7[%c0_49, %c0_50], %168 {strides = array<i32>} : memref<320x128xf32, #tpu.memory_space<vmem>>, vector<320x128xf32>,
    %c0_51 = arith.constant 0 : index
    %c0_52 = arith.constant 0 : index
    %170 = vector.load %arg7[%c0_51, %c0_52] : memref<320x128xf32, #tpu.memory_space<vmem>>, vector<16x128xf32>
    %c0_i32_53 = arith.constant 0 : i32
    %171 = vector.broadcast %c0_i32_53 : i32 to vector<16x128xi32>
    %c16_54 = arith.constant 16 : index
    %c0_55 = arith.constant 0 : index
    %172 = vector.load %arg7[%c16_54, %c0_55] : memref<320x128xf32, #tpu.memory_space<vmem>>, vector<16x128xf32>
    %173 = arith.cmpf ogt, %172, %170 : vector<16x128xf32>
    %c1_i32_56 = arith.constant 1 : i32
    %174 = vector.broadcast %c1_i32_56 : i32 to vector<16x128xi32>
    %175 = arith.select %173, %174, %171 : vector<16x128xi1>, vector<16x128xi32>
    %176 = arith.select %173, %172, %170 : vector<16x128xi1>, vector<16x128xf32>
    %c32_57 = arith.constant 32 : index
    %c0_58 = arith.constant 0 : index
    %177 = vector.load %arg7[%c32_57, %c0_58] : memref<320x128xf32, #tpu.memory_space<vmem>>, vector<16x128xf32>
    %178 = arith.cmpf ogt, %177, %176 : vector<16x128xf32>
    %c2_i32_59 = arith.constant 2 : i32
    %179 = vector.broadcast %c2_i32_59 : i32 to vector<16x128xi32>
    %180 = arith.select %178, %179, %175 : vector<16x128xi1>, vector<16x128xi32>
    %181 = arith.select %178, %177, %176 : vector<16x128xi1>, vector<16x128xf32>
    %c48_60 = arith.constant 48 : index
    %c0_61 = arith.constant 0 : index
    %182 = vector.load %arg7[%c48_60, %c0_61] : memref<320x128xf32, #tpu.memory_space<vmem>>, vector<16x128xf32>
    %183 = arith.cmpf ogt, %182, %181 : vector<16x128xf32>
    %c3_i32_62 = arith.constant 3 : i32
    %184 = vector.broadcast %c3_i32_62 : i32 to vector<16x128xi32>
    %185 = arith.select %183, %184, %180 : vector<16x128xi1>, vector<16x128xi32>
    %186 = arith.select %183, %182, %181 : vector<16x128xi1>, vector<16x128xf32>
    %c64_63 = arith.constant 64 : index
    %c0_64 = arith.constant 0 : index
    %187 = vector.load %arg7[%c64_63, %c0_64] : memref<320x128xf32, #tpu.memory_space<vmem>>, vector<16x128xf32>
    %188 = arith.cmpf ogt, %187, %186 : vector<16x128xf32>
    %c4_i32_65 = arith.constant 4 : i32
    %189 = vector.broadcast %c4_i32_65 : i32 to vector<16x128xi32>
    %190 = arith.select %188, %189, %185 : vector<16x128xi1>, vector<16x128xi32>
    %191 = arith.select %188, %187, %186 : vector<16x128xi1>, vector<16x128xf32>
    %c80_66 = arith.constant 80 : index
    %c0_67 = arith.constant 0 : index
    %192 = vector.load %arg7[%c80_66, %c0_67] : memref<320x128xf32, #tpu.memory_space<vmem>>, vector<16x128xf32>
    %193 = arith.cmpf ogt, %192, %191 : vector<16x128xf32>
    %c5_i32_68 = arith.constant 5 : i32
    %194 = vector.broadcast %c5_i32_68 : i32 to vector<16x128xi32>
    %195 = arith.select %193, %194, %190 : vector<16x128xi1>, vector<16x128xi32>
    %196 = arith.select %193, %192, %191 : vector<16x128xi1>, vector<16x128xf32>
    %c96_69 = arith.constant 96 : index
    %c0_70 = arith.constant 0 : index
    %197 = vector.load %arg7[%c96_69, %c0_70] : memref<320x128xf32, #tpu.memory_space<vmem>>, vector<16x128xf32>
    %198 = arith.cmpf ogt, %197, %196 : vector<16x128xf32>
    %c6_i32_71 = arith.constant 6 : i32
    %199 = vector.broadcast %c6_i32_71 : i32 to vector<16x128xi32>
    %200 = arith.select %198, %199, %195 : vector<16x128xi1>, vector<16x128xi32>
    %201 = arith.select %198, %197, %196 : vector<16x128xi1>, vector<16x128xf32>
    %c112_72 = arith.constant 112 : index
    %c0_73 = arith.constant 0 : index
    %202 = vector.load %arg7[%c112_72, %c0_73] : memref<320x128xf32, #tpu.memory_space<vmem>>, vector<16x128xf32>
    %203 = arith.cmpf ogt, %202, %201 : vector<16x128xf32>
    %c7_i32_74 = arith.constant 7 : i32
    %204 = vector.broadcast %c7_i32_74 : i32 to vector<16x128xi32>
    %205 = arith.select %203, %204, %200 : vector<16x128xi1>, vector<16x128xi32>
    %206 = arith.select %203, %202, %201 : vector<16x128xi1>, vector<16x128xf32>
    %c128_75 = arith.constant 128 : index
    %c0_76 = arith.constant 0 : index
    %207 = vector.load %arg7[%c128_75, %c0_76] : memref<320x128xf32, #tpu.memory_space<vmem>>, vector<16x128xf32>
    %208 = arith.cmpf ogt, %207, %206 : vector<16x128xf32>
    %c8_i32_77 = arith.constant 8 : i32
    %209 = vector.broadcast %c8_i32_77 : i32 to vector<16x128xi32>
    %210 = arith.select %208, %209, %205 : vector<16x128xi1>, vector<16x128xi32>
    %211 = arith.select %208, %207, %206 : vector<16x128xi1>, vector<16x128xf32>
    %c144_78 = arith.constant 144 : index
    %c0_79 = arith.constant 0 : index
    %212 = vector.load %arg7[%c144_78, %c0_79] : memref<320x128xf32, #tpu.memory_space<vmem>>, vector<16x128xf32>
    %213 = arith.cmpf ogt, %212, %211 : vector<16x128xf32>
    %c9_i32_80 = arith.constant 9 : i32
    %214 = vector.broadcast %c9_i32_80 : i32 to vector<16x128xi32>
    %215 = arith.select %213, %214, %210 : vector<16x128xi1>, vector<16x128xi32>
    %216 = arith.select %213, %212, %211 : vector<16x128xi1>, vector<16x128xf32>
    %c160_81 = arith.constant 160 : index
    %c0_82 = arith.constant 0 : index
    %217 = vector.load %arg7[%c160_81, %c0_82] : memref<320x128xf32, #tpu.memory_space<vmem>>, vector<16x128xf32>
    %218 = arith.cmpf ogt, %217, %216 : vector<16x128xf32>
    %c10_i32_83 = arith.constant 10 : i32
    %219 = vector.broadcast %c10_i32_83 : i32 to vector<16x128xi32>
    %220 = arith.select %218, %219, %215 : vector<16x128xi1>, vector<16x128xi32>
    %221 = arith.select %218, %217, %216 : vector<16x128xi1>, vector<16x128xf32>
    %c176_84 = arith.constant 176 : index
    %c0_85 = arith.constant 0 : index
    %222 = vector.load %arg7[%c176_84, %c0_85] : memref<320x128xf32, #tpu.memory_space<vmem>>, vector<16x128xf32>
    %223 = arith.cmpf ogt, %222, %221 : vector<16x128xf32>
    %c11_i32_86 = arith.constant 11 : i32
    %224 = vector.broadcast %c11_i32_86 : i32 to vector<16x128xi32>
    %225 = arith.select %223, %224, %220 : vector<16x128xi1>, vector<16x128xi32>
    %226 = arith.select %223, %222, %221 : vector<16x128xi1>, vector<16x128xf32>
    %c192_87 = arith.constant 192 : index
    %c0_88 = arith.constant 0 : index
    %227 = vector.load %arg7[%c192_87, %c0_88] : memref<320x128xf32, #tpu.memory_space<vmem>>, vector<16x128xf32>
    %228 = arith.cmpf ogt, %227, %226 : vector<16x128xf32>
    %c12_i32_89 = arith.constant 12 : i32
    %229 = vector.broadcast %c12_i32_89 : i32 to vector<16x128xi32>
    %230 = arith.select %228, %229, %225 : vector<16x128xi1>, vector<16x128xi32>
    %231 = arith.select %228, %227, %226 : vector<16x128xi1>, vector<16x128xf32>
    %c208_90 = arith.constant 208 : index
    %c0_91 = arith.constant 0 : index
    %232 = vector.load %arg7[%c208_90, %c0_91] : memref<320x128xf32, #tpu.memory_space<vmem>>, vector<16x128xf32>
    %233 = arith.cmpf ogt, %232, %231 : vector<16x128xf32>
    %c13_i32_92 = arith.constant 13 : i32
    %234 = vector.broadcast %c13_i32_92 : i32 to vector<16x128xi32>
    %235 = arith.select %233, %234, %230 : vector<16x128xi1>, vector<16x128xi32>
    %236 = arith.select %233, %232, %231 : vector<16x128xi1>, vector<16x128xf32>
    %c224_93 = arith.constant 224 : index
    %c0_94 = arith.constant 0 : index
    %237 = vector.load %arg7[%c224_93, %c0_94] : memref<320x128xf32, #tpu.memory_space<vmem>>, vector<16x128xf32>
    %238 = arith.cmpf ogt, %237, %236 : vector<16x128xf32>
    %c14_i32_95 = arith.constant 14 : i32
    %239 = vector.broadcast %c14_i32_95 : i32 to vector<16x128xi32>
    %240 = arith.select %238, %239, %235 : vector<16x128xi1>, vector<16x128xi32>
    %241 = arith.select %238, %237, %236 : vector<16x128xi1>, vector<16x128xf32>
    %c240_96 = arith.constant 240 : index
    %c0_97 = arith.constant 0 : index
    %242 = vector.load %arg7[%c240_96, %c0_97] : memref<320x128xf32, #tpu.memory_space<vmem>>, vector<16x128xf32>
    %243 = arith.cmpf ogt, %242, %241 : vector<16x128xf32>
    %c15_i32_98 = arith.constant 15 : i32
    %244 = vector.broadcast %c15_i32_98 : i32 to vector<16x128xi32>
    %245 = arith.select %243, %244, %240 : vector<16x128xi1>, vector<16x128xi32>
    %246 = arith.select %243, %242, %241 : vector<16x128xi1>, vector<16x128xf32>
    %c256_99 = arith.constant 256 : index
    %c0_100 = arith.constant 0 : index
    %247 = vector.load %arg7[%c256_99, %c0_100] : memref<320x128xf32, #tpu.memory_space<vmem>>, vector<16x128xf32>
    %248 = arith.cmpf ogt, %247, %246 : vector<16x128xf32>
    %c16_i32_101 = arith.constant 16 : i32
    %249 = vector.broadcast %c16_i32_101 : i32 to vector<16x128xi32>
    %250 = arith.select %248, %249, %245 : vector<16x128xi1>, vector<16x128xi32>
    %251 = arith.select %248, %247, %246 : vector<16x128xi1>, vector<16x128xf32>
    %c272_102 = arith.constant 272 : index
    %c0_103 = arith.constant 0 : index
    %252 = vector.load %arg7[%c272_102, %c0_103] : memref<320x128xf32, #tpu.memory_space<vmem>>, vector<16x128xf32>
    %253 = arith.cmpf ogt, %252, %251 : vector<16x128xf32>
    %c17_i32_104 = arith.constant 17 : i32
    %254 = vector.broadcast %c17_i32_104 : i32 to vector<16x128xi32>
    %255 = arith.select %253, %254, %250 : vector<16x128xi1>, vector<16x128xi32>
    %256 = arith.select %253, %252, %251 : vector<16x128xi1>, vector<16x128xf32>
    %c288_105 = arith.constant 288 : index
    %c0_106 = arith.constant 0 : index
    %257 = vector.load %arg7[%c288_105, %c0_106] : memref<320x128xf32, #tpu.memory_space<vmem>>, vector<16x128xf32>
    %258 = arith.cmpf ogt, %257, %256 : vector<16x128xf32>
    %c18_i32_107 = arith.constant 18 : i32
    %259 = vector.broadcast %c18_i32_107 : i32 to vector<16x128xi32>
    %260 = arith.select %258, %259, %255 : vector<16x128xi1>, vector<16x128xi32>
    %261 = arith.select %258, %257, %256 : vector<16x128xi1>, vector<16x128xf32>
    %c304_108 = arith.constant 304 : index
    %c0_109 = arith.constant 0 : index
    %262 = vector.load %arg7[%c304_108, %c0_109] : memref<320x128xf32, #tpu.memory_space<vmem>>, vector<16x128xf32>
    %263 = arith.cmpf ogt, %262, %261 : vector<16x128xf32>
    %c19_i32_110 = arith.constant 19 : i32
    %264 = vector.broadcast %c19_i32_110 : i32 to vector<16x128xi32>
    %265 = arith.select %263, %264, %260 : vector<16x128xi1>, vector<16x128xi32>
    %266 = arith.select %263, %262, %261 : vector<16x128xi1>, vector<16x128xf32>
    %c19_i32_111 = arith.constant 19 : i32
    %267 = vector.broadcast %c19_i32_111 : i32 to vector<16x128xi32>
    %268 = arith.cmpi eq, %265, %267 : vector<16x128xi32>
    %c255_i32_112 = arith.constant 255 : i32
    %269 = vector.broadcast %c255_i32_112 : i32 to vector<16x128xi32>
    %270 = arith.select %268, %269, %265 : vector<16x128xi1>, vector<16x128xi32>
    %cst_113 = arith.constant 4.800000e+01 : f32
    %271 = vector.broadcast %cst_113 : f32 to vector<16x128xf32>
    %272 = arith.cmpf olt, %266, %271 : vector<16x128xf32>
    %c255_i32_114 = arith.constant 255 : i32
    %273 = vector.broadcast %c255_i32_114 : i32 to vector<16x128xi32>
    %274 = arith.select %272, %273, %270 : vector<16x128xi1>, vector<16x128xi32>
    %c0_115 = arith.constant 0 : index
    %c0_116 = arith.constant 0 : index
    %c0_117 = arith.constant 0 : index
    %275 = vector.load %arg5[%c0_115, %c0_116, %c0_117] : memref<1x16x128xi32, #tpu.memory_space<vmem>>, vector<1x16x128xi32>
    %276 = vector.shape_cast %275 : vector<1x16x128xi32> to vector<16x128xi32>
    %277 = vector.shape_cast %274 : vector<16x128xi32> to vector<1x16x128xi32>
    tpu.vector_store %arg5[%c0_115, %c0_116, %c0_117], %277 {strides = array<i32>} : memref<1x16x128xi32, #tpu.memory_space<vmem>>, vector<1x16x128xi32>,
    return
  }
  func.func @transform_0(%arg0: i32, %arg1: i32) -> (i32, i32, i32) {
    %c0_i32 = arith.constant 0 : i32
    %c0_i32_0 = arith.constant 0 : i32
    return %arg0, %arg1, %c0_i32 : i32, i32, i32
  }
  func.func @transform_1(%arg0: i32, %arg1: i32) -> (i32, i32) {
    %c0_i32 = arith.constant 0 : i32
    %c0_i32_0 = arith.constant 0 : i32
    %c0_i32_1 = arith.constant 0 : i32
    return %c0_i32, %c0_i32_0 : i32, i32
  }
  func.func @transform_2(%arg0: i32, %arg1: i32) -> (i32, i32) {
    %c0_i32 = arith.constant 0 : i32
    %c0_i32_0 = arith.constant 0 : i32
    %c0_i32_1 = arith.constant 0 : i32
    return %c0_i32, %c0_i32_0 : i32, i32
  }
  func.func @transform_3(%arg0: i32, %arg1: i32) -> (i32, i32, i32) {
    %c0_i32 = arith.constant 0 : i32
    %c0_i32_0 = arith.constant 0 : i32
    return %arg0, %arg1, %c0_i32 : i32, i32, i32
  }
}

</mosaic_0001>

<bundles_post_ra>
// kernel: tpu_custom_call.1
= control target key start
LH: loop header
LB: loop body
LE: loop exit
PB: predicated region body
PF: predicated region fallthrough
CT: control target
= control target key end

     0   :  { %s5011_s0 = inlined_call_operand.hbm [shape: s32[2,128,128], index: 0, kind: input, shape index: {}]   ;;  %s5012_s1 = inlined_call_operand.hbm [shape: bf16[16,128], index: 1, kind: input, shape index: {}]   ;;  %s5013_s2 = inlined_call_operand.hbm [shape: bf16[128,128], index: 2, kind: input, shape index: {}]   ;;  %s5014_s3 = inlined_call_operand.hbm [shape: s32[2,16,128], index: 3, kind: output, shape index: {}]  }
   0x1   :  { %5022 = sst [smem:[#allocation14_spill]] %s5012_s1 }
   0x2   :  { %8 = vsyncpa [#allocation5], 0 }
   0x3   :  { %10 = vsyncpa [#allocation5 + $0x1], 0 }
   0x4   :  { %11 = vsyncpa [#allocation8], 0 }
   0x5   :  { %12 = vsyncpa [#allocation6], 0 }
   0x6   :  { %14 = vsyncpa [#allocation6 + $0x1], 0  ;;  %s3706_s12 = smov 0   ;;  %s3708_s13 = smov 0  }
   0x7   :  { %s3710_s14 = smov 0   ;;  %s3712_s15 = smov 0  }
   0x8   :  { %s3714_s16 = smov 0   ;;  %s3716_s17 = smov 0  }
   0x9 LB: > { %s2441_s18 = sadd.s32 4294967295, %s3674_s17   ;;  %s2442_s19 = sadd.s32 4294967294, %s3674_s17   ;;  %s3674_s17 = sphi %s3716_s17, %s20_s17   ;;  %s3670_s16 = sphi %s3714_s16, %s5120_s16   ;;  %s3666_s15 = sphi %s3712_s15, %s5119_s15   ;;  %s3662_s14 = sphi %s3710_s14, %s5118_s14   ;;  %s3658_s13 = sphi %s3708_s13, %s5117_s13   ;;  %s3654_s12 = sphi %s3706_s12, %s5116_s12  }
   0xa   : > { %p54_p0 = scmp.ne.s32.totalorder %s3658_s13, %s3654_s12  ;;  %p3740_p1 = scmp.eq.s32.totalorder %s2441_s18, 0 }
   0xb   : > { %p3744_p2 = scmp.eq.s32.totalorder %s2441_s18, 1  ;;  %p128_p3 = scmp.eq.s32.totalorder %s2442_s19, 1 }
   0xc   : > { %p3750_p4 = por %p3740_p1, %p54_p0  ;;  %p2443_p5 = scmp.ge.s32.totalorder %s3674_s17, 1 }
   0xd   : > { %p3755_p6 = por %p128_p3, %p54_p0  ;;  %p135_p7 = scmp.lt.s32.totalorder %s3674_s17, 3 }
   0xe   : > { %s5027_s1 = sld [smem:[#allocation14_spill]]  ;;  %s3676_s28 = smov [#allocation7]  }
   0xf   : > { %p3763_p8 = pnand %p2443_p5, %p135_p7  ;;  %s148_s29 = sshll.u32 %s3676_s28, 4  ;;  %s149_s29 = int_to_ptr.vmem [resolvable:$true] %s148_s29 }
  0x10   : > { %p2446_p11 = scmp.ge.s32.totalorder %s3674_s17, 2  ;;  %s160_s5 = sshll.u32 %s5013_s2, 4  ;;  %s161_s5 = int_to_ptr.hbm [resolvable:$true] %s160_s5 }
  0x11   : > { %p3402_p9 = pneg %p3763_p8  ;;  %s3677_s6 = smov 64  }
  0x12   : > { %s3678_s7 = smov 4   ;;  %s3679_s8 = smov [#allocation9]  }
  0x13   : > { %p3403_p10 = pnand %p3402_p9, %p3740_p1  ;;  %s162_s9 = sshll.u32 %s3679_s8, 4  ;;  %s163_s9 = int_to_ptr.vmem [resolvable:$true] %s162_s9 }
  0x14   : > { %s146_s26 = sshll.u32 %s5027_s1, 4  ;;  %s32_s10 = sadd.s32 1, %s3670_s16  ;;  %s147_s26 = int_to_ptr.hbm [resolvable:$true] %s146_s26 }
  0x15   : > { %3405 = dma.hbm_to_vmem [thread:$0]  (!%p3403_p10), %s147_s26, 128, %s149_s29, [#allocation8], %s3677_s6, %s3677_s6, %s3678_s7  }
  0x16   : > { %3408 = dma.hbm_to_vmem [thread:$0]  (!%p3403_p10), %s161_s5, 1024, %s163_s9, [#allocation8], %s3677_s6, %s3677_s6, %s3678_s7  }
  0x17   : > { %s41_s11 = sadd.s32 1, %s3662_s14  ;;  %p34_p12 = scmp.ge.s32.totalorder %s32_s10, 2 }
  0x18   : > { %p48_p13 = scmp.ne.s32.totalorder %s3662_s14, %s3658_s13  ;;  %p49_p0 = scmp.eq.s32.totalorder %s3674_s17, 0 }
  0x19   : > { %p3419_p3 = scmp.lt.s32.totalorder %s3674_s17, 2  ;;  %s5122_s10 = smov (%p34_p12, %s32_s10), 0 }
  0x1a   : > { %p3783_p5 = por %p49_p0, %p48_p13  ;;  %p3789_p7 = por %p3744_p2, %p48_p13 }
  0x1b   : > { %s36_s24 = ssub.s32 %s3670_s16, %s5122_s10  ;;  %s176_s25 = sand.u32 1, %s3662_s14  }
  0x1c   : > { %p39_p9 = scmp.eq.s32.totalorder %s36_s24, 0  ;;  %s2447_s26 = sshll.u32 %s176_s25, 7 }
  0x1d   : > { %s3216_s28 = sshll.u32 %s3670_s16, 7  ;;  %s180_s7 = scalar_lea.vmem [#allocation4], %s2447_s26 }
  0x1e   : > { %s3798_s29 = scalar_select %p39_p9, %s3662_s14, %s41_s11  }
  0x1f   : > { %s187_s5 = scalar_lea.hbm %s5011_s0, %s3216_s28  ;;  %s190_s8 = sshll.u32 %s180_s7, 4  ;;  %s191_s8 = int_to_ptr.vmem [resolvable:$true] %s190_s8 }
  0x20   : > { %s188_s6 = sshll.u32 %s187_s5, 4  ;;  %p3410_p2 = pnand %p3419_p3, %p3783_p5  ;;  %s189_s6 = int_to_ptr.hbm [resolvable:$true] %s188_s6 }
  0x21   : > { %s177_s21 = scalar_lea.sflag [#allocation5], %s176_s25  ;;  %s3680_s9 = smov 128  }
  0x22   : > { %s3681_s1 = smov 8   ;;  %202 = sbr.rel (%p3763_p8) target bundleno = 545 (0x221), region = 32 }
  0x23   : > { %3412 = dma.hbm_to_vmem [thread:$0]  (!%p3410_p2), %s189_s6, 2048, %s191_s8, %s177_s21, %s3680_s9, %s3680_s9, %s3681_s1  }
  0x24   : > { %s3810_s11 = sand.u32 (!%p3763_p8), 1, %s3658_s13  }
  0x25   : > { %s2451_s24 = sshll.u32 (!%p3763_p8), %s3810_s11, 7  ;;  %s205_s26 = scalar_lea.sflag (!%p3763_p8), [#allocation5], %s3810_s11 }
  0x26   : > { %s3814_s28 = scalar_lea.vmem (!%p3763_p8), [#allocation4], %s2451_s24 }
  0x27   : > { %3641 = dma.done.wait (%p3750_p4), %s205_s26, 2048  }
  0x28   : > { %3643 = vsyncadd (%p3750_p4), %s205_s26, 4294965248 }
  0x29   : > { %3645 = dma.done.wait (%p3740_p1), [#allocation8], 1152  }
  0x2a   : > { %3647 = vsyncadd (%p3740_p1), [#allocation8], 4294966144  ;;  %v3825_v0 = vld [vmem:[%s3814_s28 + $0x70] sm:$0xff]  ;;  %v3828_v1 = vld [vmem:[%s3814_s28 + $0x78] sm:$0xff]  ;;  %v3682_v4 = vmov 1.0|1.0  }
  0x2b   : > { %v3831_v2 = vld [vmem:[%s3814_s28 + $0x60] sm:$0xff]  ;;  %vm276_vm0 = vcmp.eq.s32.totalorder %v3825_v0, 0  ;;  %vm277_vm1 = vcmp.eq.s32.totalorder %v3828_v1, 0  ;;  %vm356_vm2 = vcmp.eq.s32.totalorder %v3825_v0, 1  ;;  %vm357_vm3 = vcmp.eq.s32.totalorder %v3828_v1, 1  ;;  %v3838_v3 = vld [vmem:[%s3814_s28 + $0x68] sm:$0xff] }
  0x2c   : > { %vm2475_vm4 = vmpackc.low %vm277_vm1, %vm276_vm0  ;;  %vm430_vm5 = vcmp.eq.s32.totalorder %v3825_v0, 2  ;;  %vm431_vm6 = vcmp.eq.s32.totalorder %v3828_v1, 2  ;;  %vm504_vm7 = vcmp.eq.s32.totalorder %v3825_v0, 3  ;;  %vm505_vm8 = vcmp.eq.s32.totalorder %v3828_v1, 3  ;;  %v3851_v5 = vld [vmem:[%s3814_s28 + $0x50] sm:$0xff]  ;;  %v3854_v6 = vld [vmem:[%s3814_s28 + $0x58] sm:$0xff] }
  0x2d   : > { %2476 = vmatpush.bf16.msk.msra.mxu0 %vm2475_vm4, %v3682_v4  ;;  %vm2507_vm9 = vmpackc.low %vm357_vm3, %vm356_vm2  ;;  %vm274_vm10 = vcmp.eq.s32.totalorder %v3831_v2, 0  ;;  %vm275_vm11 = vcmp.eq.s32.totalorder %v3838_v3, 0  ;;  %vm354_vm13 = vcmp.eq.s32.totalorder %v3831_v2, 1  ;;  %vm355_vm14 = vcmp.eq.s32.totalorder %v3838_v3, 1  ;;  %v3869_v7 = vld [vmem:[%s3814_s28 + $0x40] sm:$0xff]  ;;  %v3872_v8 = vld [vmem:[%s3814_s28 + $0x48] sm:$0xff] }
  0x2e   : > { %2508 = vmatpush.bf16.msk.msra.mxu1 %vm2507_vm9, %v3682_v4  ;;  %vm2539_vm12 = vmpackc.low %vm431_vm6, %vm430_vm5  ;;  %vm428_vm0 = vcmp.eq.s32.totalorder %v3831_v2, 2  ;;  %vm429_vm1 = vcmp.eq.s32.totalorder %v3838_v3, 2  ;;  %vm502_vm3 = vcmp.eq.s32.totalorder %v3831_v2, 3  ;;  %vm503_vm4 = vcmp.eq.s32.totalorder %v3838_v3, 3  ;;  %v3887_v9 = vld [vmem:[%s3814_s28 + $0x30] sm:$0xff]  ;;  %v3890_v10 = vld [vmem:[%s3814_s28 + $0x38] sm:$0xff] }
  0x2f   : > { %2540 = vmatpush.bf16.msk.msra.mxu2 %vm2539_vm12, %v3682_v4  ;;  %vm2571_vm15 = vmpackc.low %vm505_vm8, %vm504_vm7  ;;  %vm272_vm6 = vcmp.eq.s32.totalorder %v3851_v5, 0  ;;  %vm273_vm9 = vcmp.eq.s32.totalorder %v3854_v6, 0  ;;  %vm352_vm8 = vcmp.eq.s32.totalorder %v3851_v5, 1  ;;  %vm353_vm12 = vcmp.eq.s32.totalorder %v3854_v6, 1  ;;  %v3905_v11 = vld [vmem:[%s3814_s28 + $0x20] sm:$0xff]  ;;  %v3908_v12 = vld [vmem:[%s3814_s28 + $0x28] sm:$0xff] }
  0x30   : > { %2572 = vmatpush.bf16.msk.msra.mxu3 %vm2571_vm15, %v3682_v4  ;;  %vm2477_vm2 = vmpackc.low %vm275_vm11, %vm274_vm10  ;;  %vm426_vm11 = vcmp.eq.s32.totalorder %v3851_v5, 2  ;;  %vm500_vm15 = vcmp.eq.s32.totalorder %v3851_v5, 3  ;;  %v3923_v13 = vld [vmem:[%s3814_s28 + $0x10] sm:$0xff]  ;;  %v3926_v14 = vld [vmem:[%s3814_s28 + $0x18] sm:$0xff]  ;;  %v5031_v18 = vmov 0  ;;  %v5033_v19 = vmov 0 }
  0x31   : > { %2478 = vmatpush.bf16.msk.msra.mxu0 %vm2477_vm2, %v3682_v4  ;;  %vm2509_vm5 = vmpackc.low %vm355_vm14, %vm354_vm13  ;;  %vm427_vm13 = vcmp.eq.s32.totalorder %v3854_v6, 2  ;;  %vm270_vm2 = vcmp.eq.s32.totalorder %v3869_v7, 0  ;;  %v3941_v15 = vld [vmem:[%s3814_s28] sm:$0xff]  ;;  %v3944_v16 = vld [vmem:[%s3814_s28 + $0x8] sm:$0xff]  ;;  %v5036_v20 = vmov 0  ;;  %v5054_v34 = vmov 0 }
  0x32   : > { %2510 = vmatpush.bf16.msk.msra.mxu1 %vm2509_vm5, %v3682_v4  ;;  %vm2541_vm7 = vmpackc.low %vm429_vm1, %vm428_vm0  ;;  %vm501_vm0 = vcmp.eq.s32.totalorder %v3854_v6, 3  ;;  %vm271_vm5 = vcmp.eq.s32.totalorder %v3872_v8, 0  ;;  %v3964_v17 = vld [vmem:[#allocation7] sm:$0xff]  ;;  %v4303_v25 = vld [vmem:[%s3814_s28 + $0x70] sm:$0xff]  ;;  %v5075_v50 = vmov 0  ;;  %v5083_v56 = vmov 0 }
  0x33   : > { %2542 = vmatpush.bf16.msk.msra.mxu2 %vm2541_vm7, %v3682_v4  ;;  %vm2573_vm10 = vmpackc.low %vm503_vm4, %vm502_vm3  ;;  %vm350_vm4 = vcmp.eq.s32.totalorder %v3869_v7, 1  ;;  %vm351_vm7 = vcmp.eq.s32.totalorder %v3872_v8, 1  ;;  %v4279_v23 = vld [vmem:[%s3814_s28 + $0x60] sm:$0xff]  ;;  %v4307_v26 = vld [vmem:[%s3814_s28 + $0x78] sm:$0xff]  ;;  %s2454_s1 = sshll.u32 %s3810_s11, 4  ;;  %s3246_s20 = sshll.u32 %s3666_s15, 4 }
  0x34   : > { %2574 = vmatpush.bf16.msk.msra.mxu3 %vm2573_vm10, %v3682_v4  ;;  %vm2479_vm14 = vmpackc.low %vm273_vm9, %vm272_vm6  ;;  %vm424_vm9 = vcmp.eq.s32.totalorder %v3869_v7, 2  ;;  %vm498_vm10 = vcmp.eq.s32.totalorder %v3869_v7, 3  ;;  %v4331_v29 = vld [vmem:[%s3814_s28 + $0x68] sm:$0xff]  ;;  %v4352_v32 = vld [vmem:[%s3814_s28 + $0x50] sm:$0xff]  ;;  %s2331_s18 = scalar_lea.hbm %s5014_s3, %s3246_s20  ;;  %s241_s25 = scalar_lea.vmem [#allocation10], %s2454_s1 }
  0x35   : > { %2480 = vmatpush.bf16.msk.msra.mxu0 %vm2479_vm14, %v3682_v4  ;;  %vm2511_vm1 = vmpackc.low %vm353_vm12, %vm352_vm8  ;;  %vm425_vm8 = vcmp.eq.s32.totalorder %v3872_v8, 2  ;;  %vm268_vm14 = vcmp.eq.s32.totalorder %v3887_v9, 0  ;;  %v4356_v33 = vld [vmem:[%s3814_s28 + $0x58] sm:$0xff]  ;;  %v4386_v37 = vld [vmem:[%s3814_s28 + $0x40] sm:$0xff]  ;;  %s2332_s30 = sshll.u32 %s241_s25, 4  ;;  %s2334_s15 = sshll.u32 %s2331_s18, 4  ;;  %s2333_s30 = int_to_ptr.vmem [resolvable:$true] %s2332_s30  ;;  %s2335_s15 = int_to_ptr.hbm [resolvable:$true] %s2334_s15 }
  0x36   : > { %2512 = vmatpush.bf16.msk.msra.mxu1 %vm2511_vm1, %v3682_v4  ;;  %vm2543_vm3 = vmpackc.low %vm427_vm13, %vm426_vm11  ;;  %vm499_vm11 = vcmp.eq.s32.totalorder %v3872_v8, 3  ;;  %vm269_vm1 = vcmp.eq.s32.totalorder %v3890_v10, 0  ;;  %v4390_v38 = vld [vmem:[%s3814_s28 + $0x48] sm:$0xff]  ;;  %v4413_v42 = vld [vmem:[%s3814_s28 + $0x30] sm:$0xff]  ;;  %s2318_s4 = scalar_lea.sflag [#allocation6], %s3810_s11  ;;  %s3602_s5 = sshra.s32 %s2335_s15, 4  ;;  %s3603_s5 = int_to_ptr.hbm [resolvable:$true] %s3602_s5 }
  0x37   : > { %2544 = vmatpush.bf16.msk.msra.mxu2 %vm2543_vm3, %v3682_v4  ;;  %vm2575_vm6 = vmpackc.low %vm501_vm0, %vm500_vm15  ;;  %vm348_vm0 = vcmp.eq.s32.totalorder %v3887_v9, 1  ;;  %vm349_vm3 = vcmp.eq.s32.totalorder %v3890_v10, 1  ;;  %v4417_v43 = vld [vmem:[%s3814_s28 + $0x38] sm:$0xff]  ;;  %v4449_v47 = vld [vmem:[%s3814_s28 + $0x20] sm:$0xff]  ;;  %s3604_s6 = scalar_lea.hbm %s3603_s5, 16  ;;  %s3608_s21 = scalar_lea.hbm %s5014_s3, 32 }
  0x38   : > { %2576 = vmatpush.bf16.msk.msra.mxu3 %vm2575_vm6, %v3682_v4  ;;  %vm2481_vm12 = vmpackc.low %vm271_vm5, %vm270_vm2  ;;  %vm422_vm5 = vcmp.eq.s32.totalorder %v3887_v9, 2  ;;  %vm496_vm6 = vcmp.eq.s32.totalorder %v3887_v9, 3  ;;  %v4453_v48 = vld [vmem:[%s3814_s28 + $0x28] sm:$0xff]  ;;  %v4471_v51 = vld [vmem:[%s3814_s28 + $0x10] sm:$0xff]  ;;  %p3605_p1 = scmp.ne.s32.totalorder %s3603_s5, %s3604_s6  ;;  %p3609_p10 = scmp.lt.s32.totalorder %s3603_s5, %s5014_s3 }
  0x39   : > { %2482 = vmatpush.bf16.msk.msra.mxu0 %vm2481_vm12, %v3682_v4  ;;  %vm2513_vm13 = vmpackc.low %vm351_vm7, %vm350_vm4  ;;  %vm423_vm4 = vcmp.eq.s32.totalorder %v3890_v10, 2  ;;  %vm266_vm12 = vcmp.eq.s32.totalorder %v3905_v11, 0  ;;  %v4475_v52 = vld [vmem:[%s3814_s28 + $0x18] sm:$0xff]  ;;  %v4518_v57 = vld [vmem:[%s3814_s28] sm:$0xff]  ;;  %p3610_p12 = scmp.lt.s32.totalorder %s3608_s21, %s3604_s6 }
  0x3a   : > { %2514 = vmatpush.bf16.msk.msra.mxu1 %vm2513_vm13, %v3682_v4  ;;  %vm2545_vm15 = vmpackc.low %vm425_vm8, %vm424_vm9  ;;  %vm497_vm9 = vcmp.eq.s32.totalorder %v3890_v10, 3  ;;  %vm267_vm13 = vcmp.eq.s32.totalorder %v3908_v12, 0  ;;  %v4522_v58 = vld [vmem:[%s3814_s28 + $0x8] sm:$0xff]  ;;  %v4525_v59 = vld [vmem:[#allocation9 + $0x38] sm:$0xff]  ;;  %p3606_p4 = pnand %p3605_p1, %p3789_p7 }
  0x3b   : > { %2546 = vmatpush.bf16.msk.msra.mxu2 %vm2545_vm15, %v3682_v4  ;;  %vm2577_vm2 = vmpackc.low %vm499_vm11, %vm498_vm10  ;;  %vm346_vm11 = vcmp.eq.s32.totalorder %v3905_v11, 1  ;;  %vm347_vm15 = vcmp.eq.s32.totalorder %v3908_v12, 1  ;;  %v4552_v62 = vld [vmem:[#allocation9 + $0x30] sm:$0xff]  ;;  %v4558_v63 = vld [vmem:[#allocation7] sm:$0xff]  ;;  %p3611_p13 = por %p3610_p12, %p3609_p10 }
  0x3c   : > { %2578 = vmatpush.bf16.msk.msra.mxu3 %vm2577_vm2, %v3682_v4  ;;  %vm2483_vm7 = vmpackc.low %vm269_vm1, %vm268_vm14  ;;  %vm420_vm1 = vcmp.eq.s32.totalorder %v3905_v11, 2  ;;  %vm494_vm2 = vcmp.eq.s32.totalorder %v3905_v11, 3  ;;  %v3239_v21 = vld [vmem:[#allocation9 + $0x8] sm:$0xff]  ;;  %v3238_v27 = vld [vmem:[#allocation9] sm:$0xff]  ;;  %p3607_p8 = pneg %p3606_p4 }
  0x3d   : > { %2484 = vmatpush.bf16.msk.msra.mxu0 %vm2483_vm7, %v3682_v4  ;;  %vm2515_vm8 = vmpackc.low %vm349_vm3, %vm348_vm0  ;;  %vm421_vm0 = vcmp.eq.s32.totalorder %v3908_v12, 2  ;;  %vm264_vm7 = vcmp.eq.s32.totalorder %v3923_v13, 0 }
  0x3e   : > { %2516 = vmatpush.bf16.msk.msra.mxu1 %vm2515_vm8, %v3682_v4  ;;  %vm2547_vm10 = vmpackc.low %vm423_vm4, %vm422_vm5  ;;  %vm495_vm5 = vcmp.eq.s32.totalorder %v3908_v12, 3  ;;  %vm265_vm8 = vcmp.eq.s32.totalorder %v3926_v14, 0  ;;  %p3612_p0 = pnand %p3611_p13, %p3607_p8 }
  0x3f   : > { %2548 = vmatpush.bf16.msk.msra.mxu2 %vm2547_vm10, %v3682_v4  ;;  %vm2579_vm14 = vmpackc.low %vm497_vm9, %vm496_vm6  ;;  %vm344_vm9 = vcmp.eq.s32.totalorder %v3923_v13, 1  ;;  %vm345_vm10 = vcmp.eq.s32.totalorder %v3926_v14, 1 }
  0x40   : > { %2580 = vmatpush.bf16.msk.msra.mxu3 %vm2579_vm14, %v3682_v4  ;;  %vm2485_vm3 = vmpackc.low %vm267_vm13, %vm266_vm12  ;;  %vm418_vm13 = vcmp.eq.s32.totalorder %v3923_v13, 2  ;;  %vm492_vm14 = vcmp.eq.s32.totalorder %v3923_v13, 3 }
  0x41   : > { %2486 = vmatpush.bf16.msk.msra.mxu0 %vm2485_vm3, %v3682_v4  ;;  %vm2517_vm4 = vmpackc.low %vm347_vm15, %vm346_vm11  ;;  %vm419_vm11 = vcmp.eq.s32.totalorder %v3926_v14, 2  ;;  %vm262_vm3 = vcmp.eq.s32.totalorder %v3941_v15, 0 }
  0x42   : > { %2518 = vmatpush.bf16.msk.msra.mxu1 %vm2517_vm4, %v3682_v4  ;;  %vm2549_vm6 = vmpackc.low %vm421_vm0, %vm420_vm1  ;;  %vm493_vm1 = vcmp.eq.s32.totalorder %v3926_v14, 3  ;;  %vm263_vm4 = vcmp.eq.s32.totalorder %v3944_v16, 0 }
  0x43   : > { %2550 = vmatpush.bf16.msk.msra.mxu2 %vm2549_vm6, %v3682_v4  ;;  %vm2581_vm12 = vmpackc.low %vm495_vm5, %vm494_vm2  ;;  %vm342_vm5 = vcmp.eq.s32.totalorder %v3941_v15, 1  ;;  %vm343_vm6 = vcmp.eq.s32.totalorder %v3944_v16, 1 }
  0x44   : > { %2582 = vmatpush.bf16.msk.msra.mxu3 %vm2581_vm12, %v3682_v4  ;;  %vm2487_vm15 = vmpackc.low %vm265_vm8, %vm264_vm7  ;;  %vm416_vm8 = vcmp.eq.s32.totalorder %v3941_v15, 2  ;;  %vm417_vm12 = vcmp.eq.s32.totalorder %v3944_v16, 2 }
  0x45   : > { %2488 = vmatpush.bf16.msk.msra.mxu0 %vm2487_vm15, %v3682_v4  ;;  %vm2519_vm0 = vmpackc.low %vm345_vm10, %vm344_vm9  ;;  %vm490_vm10 = vcmp.eq.s32.totalorder %v3941_v15, 3  ;;  %vm491_vm15 = vcmp.eq.s32.totalorder %v3944_v16, 3 }
  0x46   : > { %2520 = vmatpush.bf16.msk.msra.mxu1 %vm2519_vm0, %v3682_v4  ;;  %vm2551_vm2 = vmpackc.low %vm419_vm11, %vm418_vm13  ;;  %vm578_vm11 = vcmp.eq.s32.totalorder %v3825_v0, 4  ;;  %vm652_vm0 = vcmp.eq.s32.totalorder %v3825_v0, 5 }
  0x47   : > { %2552 = vmatpush.bf16.msk.msra.mxu2 %vm2551_vm2, %v3682_v4  ;;  %vm2583_vm7 = vmpackc.low %vm493_vm1, %vm492_vm14  ;;  %vm579_vm14 = vcmp.eq.s32.totalorder %v3828_v1, 4  ;;  %vm726_vm2 = vcmp.eq.s32.totalorder %v3825_v0, 6 }
  0x48   : > { %2584 = vmatpush.bf16.msk.msra.mxu3 %vm2583_vm7, %v3682_v4  ;;  %vm2489_vm9 = vmpackc.low %vm263_vm4, %vm262_vm3  ;;  %vm653_vm3 = vcmp.eq.s32.totalorder %v3828_v1, 5  ;;  %vm727_vm7 = vcmp.eq.s32.totalorder %v3828_v1, 6 }
  0x49   : > { %2490 = vmatpush.bf16.msk.msra.mxu0 %vm2489_vm9, %v3682_v4  ;;  %vm2521_vm13 = vmpackc.low %vm343_vm6, %vm342_vm5  ;;  %vm800_vm6 = vcmp.eq.s32.totalorder %v3825_v0, 7  ;;  %vm801_vm9 = vcmp.eq.s32.totalorder %v3828_v1, 7 }
  0x4a   : > { %2522 = vmatpush.bf16.msk.msra.mxu1 %vm2521_vm13, %v3682_v4  ;;  %vm2553_vm1 = vmpackc.low %vm417_vm12, %vm416_vm8  ;;  %vm576_vm12 = vcmp.eq.s32.totalorder %v3831_v2, 4  ;;  %vm650_vm13 = vcmp.eq.s32.totalorder %v3831_v2, 5 }
  0x4b   : > { %2554 = vmatpush.bf16.msk.msra.mxu2 %vm2553_vm1, %v3682_v4  ;;  %vm2585_vm4 = vmpackc.low %vm491_vm15, %vm490_vm10  ;;  %vm577_vm10 = vcmp.eq.s32.totalorder %v3838_v3, 4  ;;  %vm724_vm1 = vcmp.eq.s32.totalorder %v3831_v2, 6 }
  0x4c   : > { %2586 = vmatpush.bf16.msk.msra.mxu3 %vm2585_vm4, %v3682_v4  ;;  %vm2603_vm5 = vmpackc.low %vm579_vm14, %vm578_vm11  ;;  %332 = vmatmul.bf16.vlgmr.msra.gmra.mxu0 %v3964_v17  ;;  %vm651_vm11 = vcmp.eq.s32.totalorder %v3838_v3, 5  ;;  %vm798_vm4 = vcmp.eq.s32.totalorder %v3831_v2, 7 }
  0x4d   : > { %2604 = vmatpush.bf16.msk.msrb.mxu0 %vm2603_vm5, %v3682_v4  ;;  %vm2635_vm8 = vmpackc.low %vm653_vm3, %vm652_vm0  ;;  %406 = vmatmul.bf16.vlgmr.msra.gmra.mxu1 %v3964_v17  ;;  %vm725_vm0 = vcmp.eq.s32.totalorder %v3838_v3, 6  ;;  %vm574_vm5 = vcmp.eq.s32.totalorder %v3851_v5, 4 }
  0x4e   : > { %2636 = vmatpush.bf16.msk.msrb.mxu1 %vm2635_vm8, %v3682_v4  ;;  %vm2667_vm15 = vmpackc.low %vm727_vm7, %vm726_vm2  ;;  %480 = vmatmul.bf16.vlgmr.msra.gmra.mxu2 %v3964_v17  ;;  %vm799_vm2 = vcmp.eq.s32.totalorder %v3838_v3, 7  ;;  %vm648_vm8 = vcmp.eq.s32.totalorder %v3851_v5, 5 }
  0x4f   : > { %2668 = vmatpush.bf16.msk.msrb.mxu2 %vm2667_vm15, %v3682_v4  ;;  %vm2699_vm14 = vmpackc.low %vm801_vm9, %vm800_vm6  ;;  %554 = vmatmul.bf16.vlgmr.msra.gmra.mxu3 %v3964_v17  ;;  %vm575_vm6 = vcmp.eq.s32.totalorder %v3854_v6, 4  ;;  %vm649_vm15 = vcmp.eq.s32.totalorder %v3854_v6, 5 }
  0x50   : > { %2700 = vmatpush.bf16.msk.msrb.mxu3 %vm2699_vm14, %v3682_v4  ;;  %vm2605_vm3 = vmpackc.low %vm577_vm10, %vm576_vm12  ;;  %vm722_vm10 = vcmp.eq.s32.totalorder %v3851_v5, 6  ;;  %vm723_vm14 = vcmp.eq.s32.totalorder %v3854_v6, 6 }
  0x51   : > { %2606 = vmatpush.bf16.msk.msrb.mxu0 %vm2605_vm3, %v3682_v4  ;;  %vm2637_vm7 = vmpackc.low %vm651_vm11, %vm650_vm13  ;;  %vm796_vm11 = vcmp.eq.s32.totalorder %v3851_v5, 7  ;;  %vm797_vm3 = vcmp.eq.s32.totalorder %v3854_v6, 7 }
  0x52   : > { %2638 = vmatpush.bf16.msk.msrb.mxu1 %vm2637_vm7, %v3682_v4  ;;  %vm2669_vm9 = vmpackc.low %vm725_vm0, %vm724_vm1  ;;  %vm572_vm0 = vcmp.eq.s32.totalorder %v3869_v7, 4  ;;  %vm573_vm7 = vcmp.eq.s32.totalorder %v3872_v8, 4 }
  0x53   : > { %2670 = vmatpush.bf16.msk.msrb.mxu2 %vm2669_vm9, %v3682_v4  ;;  %vm2701_vm12 = vmpackc.low %vm799_vm2, %vm798_vm4  ;;  %vm646_vm2 = vcmp.eq.s32.totalorder %v3869_v7, 5  ;;  %vm647_vm9 = vcmp.eq.s32.totalorder %v3872_v8, 5 }
  0x54   : > { %2702 = vmatpush.bf16.msk.msrb.mxu3 %vm2701_vm12, %v3682_v4  ;;  %vm2607_vm13 = vmpackc.low %vm575_vm6, %vm574_vm5  ;;  %vm720_vm6 = vcmp.eq.s32.totalorder %v3869_v7, 6  ;;  %vm721_vm12 = vcmp.eq.s32.totalorder %v3872_v8, 6 }
  0x55   : > { %2608 = vmatpush.bf16.msk.msrb.mxu0 %vm2607_vm13, %v3682_v4  ;;  %vm2639_vm1 = vmpackc.low %vm649_vm15, %vm648_vm8  ;;  %vm794_vm15 = vcmp.eq.s32.totalorder %v3869_v7, 7  ;;  %vm795_vm13 = vcmp.eq.s32.totalorder %v3872_v8, 7 }
  0x56   : > { %2640 = vmatpush.bf16.msk.msrb.mxu1 %vm2639_vm1, %v3682_v4  ;;  %vm2671_vm4 = vmpackc.low %vm723_vm14, %vm722_vm10  ;;  %vm570_vm14 = vcmp.eq.s32.totalorder %v3887_v9, 4  ;;  %vm571_vm1 = vcmp.eq.s32.totalorder %v3890_v10, 4 }
  0x57   : > { %2672 = vmatpush.bf16.msk.msrb.mxu2 %vm2671_vm4, %v3682_v4  ;;  %vm2703_vm5 = vmpackc.low %vm797_vm3, %vm796_vm11  ;;  %vm644_vm3 = vcmp.eq.s32.totalorder %v3887_v9, 5  ;;  %vm645_vm4 = vcmp.eq.s32.totalorder %v3890_v10, 5 }
  0x58   : > { %2704 = vmatpush.bf16.msk.msrb.mxu3 %vm2703_vm5, %v3682_v4  ;;  %vm2609_vm8 = vmpackc.low %vm573_vm7, %vm572_vm0  ;;  %vm718_vm7 = vcmp.eq.s32.totalorder %v3887_v9, 6  ;;  %vm719_vm5 = vcmp.eq.s32.totalorder %v3890_v10, 6 }
  0x59   : > { %2610 = vmatpush.bf16.msk.msrb.mxu0 %vm2609_vm8, %v3682_v4  ;;  %vm2641_vm10 = vmpackc.low %vm647_vm9, %vm646_vm2  ;;  %vm792_vm9 = vcmp.eq.s32.totalorder %v3887_v9, 7  ;;  %vm793_vm8 = vcmp.eq.s32.totalorder %v3890_v10, 7 }
  0x5a   : > { %2642 = vmatpush.bf16.msk.msrb.mxu1 %vm2641_vm10, %v3682_v4  ;;  %vm2673_vm11 = vmpackc.low %vm721_vm12, %vm720_vm6  ;;  %vm568_vm12 = vcmp.eq.s32.totalorder %v3905_v11, 4  ;;  %vm569_vm10 = vcmp.eq.s32.totalorder %v3908_v12, 4 }
  0x5b   : > { %2674 = vmatpush.bf16.msk.msrb.mxu2 %vm2673_vm11, %v3682_v4  ;;  %vm2705_vm0 = vmpackc.low %vm795_vm13, %vm794_vm15  ;;  %vm642_vm13 = vcmp.eq.s32.totalorder %v3905_v11, 5  ;;  %vm643_vm11 = vcmp.eq.s32.totalorder %v3908_v12, 5 }
  0x5c   : > { %2706 = vmatpush.bf16.msk.msrb.mxu3 %vm2705_vm0, %v3682_v4  ;;  %vm2611_vm2 = vmpackc.low %vm571_vm1, %vm570_vm14  ;;  %vm716_vm1 = vcmp.eq.s32.totalorder %v3905_v11, 6  ;;  %vm717_vm0 = vcmp.eq.s32.totalorder %v3908_v12, 6 }
  0x5d   : > { %2612 = vmatpush.bf16.msk.msrb.mxu0 %vm2611_vm2, %v3682_v4  ;;  %vm2643_vm6 = vmpackc.low %vm645_vm4, %vm644_vm3  ;;  %vm790_vm4 = vcmp.eq.s32.totalorder %v3905_v11, 7  ;;  %vm791_vm2 = vcmp.eq.s32.totalorder %v3908_v12, 7 }
  0x5e   : > { %2644 = vmatpush.bf16.msk.msrb.mxu1 %vm2643_vm6, %v3682_v4  ;;  %vm2675_vm15 = vmpackc.low %vm719_vm5, %vm718_vm7  ;;  %vm566_vm5 = vcmp.eq.s32.totalorder %v3923_v13, 4  ;;  %vm567_vm6 = vcmp.eq.s32.totalorder %v3926_v14, 4 }
  0x5f   : > { %2676 = vmatpush.bf16.msk.msrb.mxu2 %vm2675_vm15, %v3682_v4  ;;  %vm2707_vm14 = vmpackc.low %vm793_vm8, %vm792_vm9  ;;  %vm640_vm8 = vcmp.eq.s32.totalorder %v3923_v13, 5  ;;  %vm641_vm15 = vcmp.eq.s32.totalorder %v3926_v14, 5 }
  0x60   : > { %2708 = vmatpush.bf16.msk.msrb.mxu3 %vm2707_vm14, %v3682_v4  ;;  %vm2613_vm3 = vmpackc.low %vm569_vm10, %vm568_vm12  ;;  %vm714_vm10 = vcmp.eq.s32.totalorder %v3923_v13, 6  ;;  %vm715_vm14 = vcmp.eq.s32.totalorder %v3926_v14, 6 }
  0x61   : > { %2614 = vmatpush.bf16.msk.msrb.mxu0 %vm2613_vm3, %v3682_v4  ;;  %vm2645_vm7 = vmpackc.low %vm643_vm11, %vm642_vm13  ;;  %vm788_vm11 = vcmp.eq.s32.totalorder %v3923_v13, 7  ;;  %vm789_vm3 = vcmp.eq.s32.totalorder %v3926_v14, 7 }
  0x62   : > { %2646 = vmatpush.bf16.msk.msrb.mxu1 %vm2645_vm7, %v3682_v4  ;;  %vm2677_vm9 = vmpackc.low %vm717_vm0, %vm716_vm1  ;;  %vm564_vm0 = vcmp.eq.s32.totalorder %v3941_v15, 4  ;;  %vm565_vm7 = vcmp.eq.s32.totalorder %v3944_v16, 4 }
  0x63   : > { %2678 = vmatpush.bf16.msk.msrb.mxu2 %vm2677_vm9, %v3682_v4  ;;  %vm2709_vm12 = vmpackc.low %vm791_vm2, %vm790_vm4  ;;  %vm638_vm2 = vcmp.eq.s32.totalorder %v3941_v15, 5  ;;  %vm639_vm9 = vcmp.eq.s32.totalorder %v3944_v16, 5 }
  0x64   : > { %2710 = vmatpush.bf16.msk.msrb.mxu3 %vm2709_vm12, %v3682_v4  ;;  %vm2615_vm13 = vmpackc.low %vm567_vm6, %vm566_vm5  ;;  %vm712_vm6 = vcmp.eq.s32.totalorder %v3941_v15, 6  ;;  %vm713_vm12 = vcmp.eq.s32.totalorder %v3944_v16, 6 }
  0x65   : > { %2616 = vmatpush.bf16.msk.msrb.mxu0 %vm2615_vm13, %v3682_v4  ;;  %vm2647_vm1 = vmpackc.low %vm641_vm15, %vm640_vm8  ;;  %vm786_vm15 = vcmp.eq.s32.totalorder %v3941_v15, 7  ;;  %vm787_vm13 = vcmp.eq.s32.totalorder %v3944_v16, 7 }
  0x66   : > { %2648 = vmatpush.bf16.msk.msrb.mxu1 %vm2647_vm1, %v3682_v4  ;;  %vm2679_vm4 = vmpackc.low %vm715_vm14, %vm714_vm10  ;;  %vm874_vm14 = vcmp.eq.s32.totalorder %v3825_v0, 8  ;;  %vm875_vm1 = vcmp.eq.s32.totalorder %v3828_v1, 8 }
  0x67   : > { %2680 = vmatpush.bf16.msk.msrb.mxu2 %vm2679_vm4, %v3682_v4  ;;  %vm2711_vm5 = vmpackc.low %vm789_vm3, %vm788_vm11  ;;  %vm1022_vm3 = vcmp.eq.s32.totalorder %v3825_v0, 10  ;;  %vm1023_vm4 = vcmp.eq.s32.totalorder %v3828_v1, 10 }
  0x68   : > { %2712 = vmatpush.bf16.msk.msrb.mxu3 %vm2711_vm5, %v3682_v4  ;;  %vm2617_vm8 = vmpackc.low %vm565_vm7, %vm564_vm0  ;;  %vm1096_vm7 = vcmp.eq.s32.totalorder %v3825_v0, 11  ;;  %vm1097_vm5 = vcmp.eq.s32.totalorder %v3828_v1, 11 }
  0x69   : > { %2618 = vmatpush.bf16.msk.msrb.mxu0 %vm2617_vm8, %v3682_v4  ;;  %vm2649_vm10 = vmpackc.low %vm639_vm9, %vm638_vm2  ;;  %vm872_vm9 = vcmp.eq.s32.totalorder %v3831_v2, 8  ;;  %vm873_vm8 = vcmp.eq.s32.totalorder %v3838_v3, 8 }
  0x6a   : > { %2650 = vmatpush.bf16.msk.msrb.mxu1 %vm2649_vm10, %v3682_v4  ;;  %vm2681_vm11 = vmpackc.low %vm713_vm12, %vm712_vm6  ;;  %vm1020_vm12 = vcmp.eq.s32.totalorder %v3831_v2, 10  ;;  %vm1094_vm10 = vcmp.eq.s32.totalorder %v3831_v2, 11 }
  0x6b   : > { %2682 = vmatpush.bf16.msk.msrb.mxu2 %vm2681_vm11, %v3682_v4  ;;  %vm2713_vm0 = vmpackc.low %vm787_vm13, %vm786_vm15  ;;  %vm1021_vm15 = vcmp.eq.s32.totalorder %v3838_v3, 10  ;;  %vm870_vm11 = vcmp.eq.s32.totalorder %v3851_v5, 8 }
  0x6c   : > { %2714 = vmatpush.bf16.msk.msrb.mxu3 %vm2713_vm0, %v3682_v4  ;;  %vm2731_vm2 = vmpackc.low %vm875_vm1, %vm874_vm14  ;;  %628 = vmatmul.bf16.vlgmr.msrb.gmra.mxu0 %v3964_v17  ;;  %vm1095_vm14 = vcmp.eq.s32.totalorder %v3838_v3, 11  ;;  %vm948_vm0 = vcmp.eq.s32.totalorder %v3825_v0, 9 }
  0x6d   : > { %2732 = vmatpush.bf16.msk.msra.mxu0 %vm2731_vm2, %v3682_v4  ;;  %vm2795_vm6 = vmpackc.low %vm1023_vm4, %vm1022_vm3  ;;  %702 = vmatmul.bf16.vlgmr.msrb.gmra.mxu1 %v3964_v17  ;;  %vm871_vm3 = vcmp.eq.s32.totalorder %v3854_v6, 8  ;;  %vm949_vm2 = vcmp.eq.s32.totalorder %v3828_v1, 9 }
  0x6e   : > { %vm2827_vm13 = vmpackc.low %vm1097_vm5, %vm1096_vm7  ;;  %776 = vmatmul.bf16.vlgmr.msrb.gmra.mxu2 %v3964_v17  ;;  %vm1018_vm5 = vcmp.eq.s32.totalorder %v3851_v5, 10 }
  0x6f   : > { %2796 = vmatpush.bf16.msk.msra.mxu2 %vm2795_vm6, %v3682_v4  ;;  %vm2733_vm1 = vmpackc.low %vm873_vm8, %vm872_vm9  ;;  %850 = vmatmul.bf16.vlgmr.msrb.gmra.mxu3 %v3964_v17  ;;  %vm1019_vm9 = vcmp.eq.s32.totalorder %v3854_v6, 10  ;;  %vm1092_vm6 = vcmp.eq.s32.totalorder %v3851_v5, 11 }
  0x70   : > { %2828 = vmatpush.bf16.msk.msra.mxu3 %vm2827_vm13, %v3682_v4  ;;  %vm2797_vm4 = vmpackc.low %vm1021_vm15, %vm1020_vm12  ;;  %vm1093_vm12 = vcmp.eq.s32.totalorder %v3854_v6, 11  ;;  %vm868_vm13 = vcmp.eq.s32.totalorder %v3869_v7, 8 }
  0x71   : > { %2734 = vmatpush.bf16.msk.msra.mxu0 %vm2733_vm1, %v3682_v4  ;;  %vm2829_vm7 = vmpackc.low %vm1095_vm14, %vm1094_vm10  ;;  %vm869_vm1 = vcmp.eq.s32.totalorder %v3872_v8, 8  ;;  %vm946_vm14 = vcmp.eq.s32.totalorder %v3831_v2, 9 }
  0x72   : > { %vm2735_vm8 = vmpackc.low %vm871_vm3, %vm870_vm11  ;;  %vm1016_vm3 = vcmp.eq.s32.totalorder %v3869_v7, 10 }
  0x73   : > { %2798 = vmatpush.bf16.msk.msra.mxu2 %vm2797_vm4, %v3682_v4  ;;  %vm2763_vm15 = vmpackc.low %vm949_vm2, %vm948_vm0  ;;  %vm947_vm4 = vcmp.eq.s32.totalorder %v3838_v3, 9  ;;  %vm1090_vm2 = vcmp.eq.s32.totalorder %v3869_v7, 11 }
  0x74   : > { %2830 = vmatpush.bf16.msk.msra.mxu3 %vm2829_vm7, %v3682_v4  ;;  %2764 = vmatpush.bf16.msk.msra.mxu1 %vm2763_vm15, %v3682_v4  ;;  %vm2799_vm10 = vmpackc.low %vm1019_vm9, %vm1018_vm5  ;;  %vm1017_vm7 = vcmp.eq.s32.totalorder %v3872_v8, 10  ;;  %vm1091_vm15 = vcmp.eq.s32.totalorder %v3872_v8, 11  ;;  %vm866_vm9 = vcmp.eq.s32.totalorder %v3887_v9, 8 }
  0x75   : > { %2736 = vmatpush.bf16.msk.msra.mxu0 %vm2735_vm8, %v3682_v4  ;;  %vm2831_vm11 = vmpackc.low %vm1093_vm12, %vm1092_vm6  ;;  %vm867_vm8 = vcmp.eq.s32.totalorder %v3890_v10, 8  ;;  %vm944_vm12 = vcmp.eq.s32.totalorder %v3851_v5, 9 }
  0x76   : > { %vm2737_vm0 = vmpackc.low %vm869_vm1, %vm868_vm13  ;;  %vm1014_vm1 = vcmp.eq.s32.totalorder %v3887_v9, 10 }
  0x77   : > { %2800 = vmatpush.bf16.msk.msra.mxu2 %vm2799_vm10, %v3682_v4  ;;  %vm2765_vm5 = vmpackc.low %vm947_vm4, %vm946_vm14  ;;  %vm945_vm10 = vcmp.eq.s32.totalorder %v3854_v6, 9  ;;  %vm1088_vm4 = vcmp.eq.s32.totalorder %v3887_v9, 11 }
  0x78   : > { %2832 = vmatpush.bf16.msk.msra.mxu3 %vm2831_vm11, %v3682_v4  ;;  %2766 = vmatpush.bf16.msk.msra.mxu1 %vm2765_vm5, %v3682_v4  ;;  %vm2801_vm6 = vmpackc.low %vm1017_vm7, %vm1016_vm3  ;;  %vm1015_vm11 = vcmp.eq.s32.totalorder %v3890_v10, 10  ;;  %vm1089_vm5 = vcmp.eq.s32.totalorder %v3890_v10, 11  ;;  %vm864_vm7 = vcmp.eq.s32.totalorder %v3905_v11, 8 }
  0x79   : > { %2738 = vmatpush.bf16.msk.msra.mxu0 %vm2737_vm0, %v3682_v4  ;;  %vm2833_vm13 = vmpackc.low %vm1091_vm15, %vm1090_vm2  ;;  %vm865_vm0 = vcmp.eq.s32.totalorder %v3908_v12, 8  ;;  %vm942_vm15 = vcmp.eq.s32.totalorder %v3869_v7, 9 }
  0x7a   : > { %vm2739_vm14 = vmpackc.low %vm867_vm8, %vm866_vm9  ;;  %vm1012_vm8 = vcmp.eq.s32.totalorder %v3905_v11, 10 }
  0x7b   : > { %2802 = vmatpush.bf16.msk.msra.mxu2 %vm2801_vm6, %v3682_v4  ;;  %vm2767_vm3 = vmpackc.low %vm945_vm10, %vm944_vm12  ;;  %vm943_vm6 = vcmp.eq.s32.totalorder %v3872_v8, 9  ;;  %vm1086_vm10 = vcmp.eq.s32.totalorder %v3905_v11, 11 }
  0x7c   : > { %2834 = vmatpush.bf16.msk.msra.mxu3 %vm2833_vm13, %v3682_v4  ;;  %2768 = vmatpush.bf16.msk.msra.mxu1 %vm2767_vm3, %v3682_v4  ;;  %vm2803_vm2 = vmpackc.low %vm1015_vm11, %vm1014_vm1  ;;  %vm1013_vm13 = vcmp.eq.s32.totalorder %v3908_v12, 10  ;;  %vm1087_vm3 = vcmp.eq.s32.totalorder %v3908_v12, 11  ;;  %vm862_vm11 = vcmp.eq.s32.totalorder %v3923_v13, 8 }
  0x7d   : > { %2740 = vmatpush.bf16.msk.msra.mxu0 %vm2739_vm14, %v3682_v4  ;;  %vm2835_vm9 = vmpackc.low %vm1089_vm5, %vm1088_vm4  ;;  %vm863_vm14 = vcmp.eq.s32.totalorder %v3926_v14, 8  ;;  %vm940_vm5 = vcmp.eq.s32.totalorder %v3887_v9, 9 }
  0x7e   : > { %vm2741_vm12 = vmpackc.low %vm865_vm0, %vm864_vm7  ;;  %vm1010_vm0 = vcmp.eq.s32.totalorder %v3923_v13, 10 }
  0x7f   : > { %2804 = vmatpush.bf16.msk.msra.mxu2 %vm2803_vm2, %v3682_v4  ;;  %vm2769_vm1 = vmpackc.low %vm943_vm6, %vm942_vm15  ;;  %vm941_vm2 = vcmp.eq.s32.totalorder %v3890_v10, 9  ;;  %vm1084_vm6 = vcmp.eq.s32.totalorder %v3923_v13, 11 }
  0x80   : > { %2836 = vmatpush.bf16.msk.msra.mxu3 %vm2835_vm9, %v3682_v4  ;;  %2770 = vmatpush.bf16.msk.msra.mxu1 %vm2769_vm1, %v3682_v4  ;;  %vm2805_vm4 = vmpackc.low %vm1013_vm13, %vm1012_vm8  ;;  %vm1011_vm9 = vcmp.eq.s32.totalorder %v3926_v14, 10  ;;  %vm1085_vm1 = vcmp.eq.s32.totalorder %v3926_v14, 11  ;;  %vm860_vm13 = vcmp.eq.s32.totalorder %v3941_v15, 8 }
  0x81   : > { %2742 = vmatpush.bf16.msk.msra.mxu0 %vm2741_vm12, %v3682_v4  ;;  %vm2837_vm7 = vmpackc.low %vm1087_vm3, %vm1086_vm10  ;;  %vm861_vm12 = vcmp.eq.s32.totalorder %v3944_v16, 8  ;;  %vm938_vm3 = vcmp.eq.s32.totalorder %v3905_v11, 9 }
  0x82   : > { %vm2743_vm15 = vmpackc.low %vm863_vm14, %vm862_vm11  ;;  %vm1008_vm14 = vcmp.eq.s32.totalorder %v3941_v15, 10 }
  0x83   : > { %2806 = vmatpush.bf16.msk.msra.mxu2 %vm2805_vm4, %v3682_v4  ;;  %vm2771_vm8 = vmpackc.low %vm941_vm2, %vm940_vm5  ;;  %vm939_vm4 = vcmp.eq.s32.totalorder %v3908_v12, 9  ;;  %vm1082_vm2 = vcmp.eq.s32.totalorder %v3941_v15, 11 }
  0x84   : > { %2838 = vmatpush.bf16.msk.msra.mxu3 %vm2837_vm7, %v3682_v4  ;;  %2772 = vmatpush.bf16.msk.msra.mxu1 %vm2771_vm8, %v3682_v4  ;;  %vm2807_vm10 = vmpackc.low %vm1011_vm9, %vm1010_vm0  ;;  %vm1009_vm7 = vcmp.eq.s32.totalorder %v3944_v16, 10  ;;  %vm1083_vm8 = vcmp.eq.s32.totalorder %v3944_v16, 11  ;;  %vm1170_vm9 = vcmp.eq.s32.totalorder %v3825_v0, 12 }
  0x85   : > { %2744 = vmatpush.bf16.msk.msra.mxu0 %vm2743_vm15, %v3682_v4  ;;  %vm2839_vm11 = vmpackc.low %vm1085_vm1, %vm1084_vm6  ;;  %vm1171_vm15 = vcmp.eq.s32.totalorder %v3828_v1, 12  ;;  %vm1392_vm1 = vcmp.eq.s32.totalorder %v3825_v0, 15 }
  0x86   : > { %vm2745_vm5 = vmpackc.low %vm861_vm12, %vm860_vm13  ;;  %vm936_vm12 = vcmp.eq.s32.totalorder %v3923_v13, 9 }
  0x87   : > { %2808 = vmatpush.bf16.msk.msra.mxu2 %vm2807_vm10, %v3682_v4  ;;  %vm2773_vm0 = vmpackc.low %vm939_vm4, %vm938_vm3  ;;  %vm1393_vm10 = vcmp.eq.s32.totalorder %v3828_v1, 15  ;;  %vm1168_vm4 = vcmp.eq.s32.totalorder %v3831_v2, 12 }
  0x88   : > { %2840 = vmatpush.bf16.msk.msra.mxu3 %vm2839_vm11, %v3682_v4  ;;  %2774 = vmatpush.bf16.msk.msra.mxu1 %vm2773_vm0, %v3682_v4  ;;  %vm2809_vm6 = vmpackc.low %vm1009_vm7, %vm1008_vm14  ;;  %vm937_vm11 = vcmp.eq.s32.totalorder %v3926_v14, 9  ;;  %vm1169_vm0 = vcmp.eq.s32.totalorder %v3838_v3, 12  ;;  %vm1390_vm7 = vcmp.eq.s32.totalorder %v3831_v2, 15 }
  0x89   : > { %2746 = vmatpush.bf16.msk.msra.mxu0 %vm2745_vm5, %v3682_v4  ;;  %vm2841_vm13 = vmpackc.low %vm1083_vm8, %vm1082_vm2  ;;  %vm1391_vm5 = vcmp.eq.s32.totalorder %v3838_v3, 15  ;;  %vm934_vm8 = vcmp.eq.s32.totalorder %v3941_v15, 9 }
  0x8a   : > { %vm2859_vm3 = vmpackc.low %vm1171_vm15, %vm1170_vm9  ;;  %vm935_vm9 = vcmp.eq.s32.totalorder %v3944_v16, 9 }
  0x8b   : > { %2810 = vmatpush.bf16.msk.msra.mxu2 %vm2809_vm6, %v3682_v4  ;;  %vm2955_vm14 = vmpackc.low %vm1393_vm10, %vm1392_vm1  ;;  %vm1166_vm6 = vcmp.eq.s32.totalorder %v3851_v5, 12  ;;  %vm1167_vm1 = vcmp.eq.s32.totalorder %v3854_v6, 12 }
  0x8c   : > { %2842 = vmatpush.bf16.msk.msra.mxu3 %vm2841_vm13, %v3682_v4  ;;  %vm2775_vm2 = vmpackc.low %vm937_vm11, %vm936_vm12  ;;  %924 = vmatmul.bf16.vlgmr.msra.gmra.mxu0 %v3964_v17  ;;  %vm1244_vm13 = vcmp.eq.s32.totalorder %v3825_v0, 13  ;;  %vm1245_vm12 = vcmp.eq.s32.totalorder %v3828_v1, 13 }
  0x8d   : > { %2860 = vmatpush.bf16.msk.msrb.mxu0 %vm2859_vm3, %v3682_v4  ;;  %2776 = vmatpush.bf16.msk.msra.mxu1 %vm2775_vm2, %v3682_v4  ;;  %vm2861_vm15 = vmpackc.low %vm1169_vm0, %vm1168_vm4  ;;  %vm1388_vm3 = vcmp.eq.s32.totalorder %v3851_v5, 15  ;;  %vm1164_vm0 = vcmp.eq.s32.totalorder %v3869_v7, 12  ;;  %vm1242_vm2 = vcmp.eq.s32.totalorder %v3831_v2, 13 }
  0x8e   : > { %1072 = vmatmul.bf16.vlgmr.msra.gmra.mxu2 %v3964_v17  ;;  %vm2957_vm10 = vmpackc.low %vm1391_vm5, %vm1390_vm7  ;;  %vm1165_vm7 = vcmp.eq.s32.totalorder %v3872_v8, 12 }
  0x8f   : > { %1146 = vmatmul.bf16.vlgmr.msra.gmra.mxu3 %v3964_v17  ;;  %vm2777_vm11 = vmpackc.low %vm935_vm9, %vm934_vm8  ;;  %vm1386_vm9 = vcmp.eq.s32.totalorder %v3869_v7, 15 }
  0x90   : > { %2956 = vmatpush.bf16.msk.msrb.mxu3 %vm2955_vm14, %v3682_v4  ;;  %vm1389_vm14 = vcmp.eq.s32.totalorder %v3854_v6, 15  ;;  %vm2863_vm4 = vmpackc.low %vm1167_vm1, %vm1166_vm6  ;;  %vm1162_vm1 = vcmp.eq.s32.totalorder %v3887_v9, 12 }
  0x91   : > { %2862 = vmatpush.bf16.msk.msrb.mxu0 %vm2861_vm15, %v3682_v4  ;;  %2778 = vmatpush.bf16.msk.msra.mxu1 %vm2777_vm11, %v3682_v4  ;;  %vm2891_vm5 = vmpackc.low %vm1245_vm12, %vm1244_vm13  ;;  %vm1243_vm15 = vcmp.eq.s32.totalorder %v3838_v3, 13  ;;  %vm1163_vm11 = vcmp.eq.s32.totalorder %v3890_v10, 12  ;;  %vm1240_vm12 = vcmp.eq.s32.totalorder %v3851_v5, 13 }
  0x92   : > { %vm2959_vm8 = vmpackc.low %vm1389_vm14, %vm1388_vm3  ;;  %vm1384_vm14 = vcmp.eq.s32.totalorder %v3887_v9, 15 }
  0x93   : > { %vm2865_vm6 = vmpackc.low %vm1165_vm7, %vm1164_vm0  ;;  %vm1318_vm7 = vcmp.eq.s32.totalorder %v3825_v0, 14 }
  0x94   : > { %2958 = vmatpush.bf16.msk.msrb.mxu3 %vm2957_vm10, %v3682_v4  ;;  %vm1387_vm10 = vcmp.eq.s32.totalorder %v3872_v8, 15  ;;  %vm2893_vm13 = vmpackc.low %vm1243_vm15, %vm1242_vm2  ;;  %998 = vmatmul.bf16.vlgmr.msra.gmra.mxu1 %v3964_v17  ;;  %vm1319_vm2 = vcmp.eq.s32.totalorder %v3828_v1, 14 }
  0x95   : > { %2892 = vmatpush.bf16.msk.msrb.mxu1 %vm2891_vm5, %v3682_v4  ;;  %2864 = vmatpush.bf16.msk.msrb.mxu0 %vm2863_vm4, %v3682_v4  ;;  %vm1241_vm5 = vcmp.eq.s32.totalorder %v3854_v6, 13  ;;  %vm2961_vm3 = vmpackc.low %vm1387_vm10, %vm1386_vm9  ;;  %vm1385_vm4 = vcmp.eq.s32.totalorder %v3890_v10, 15  ;;  %vm1161_vm9 = vcmp.eq.s32.totalorder %v3908_v12, 12 }
  0x96   : > { %vm4208_vm0 = vmpackc.low %vm1163_vm11, %vm1162_vm1  ;;  %vm1239_vm1 = vcmp.eq.s32.totalorder %v3872_v8, 13 }
  0x97   : > { %v5032_v18 = vsel %vm4208_vm0, 4294967295, %v5031_v18  ;;  %vm2895_vm15 = vmpackc.low %vm1241_vm5, %vm1240_vm12  ;;  %vm1382_vm0 = vcmp.eq.s32.totalorder %v3905_v11, 15  ;;  %vm1316_vm5 = vcmp.eq.s32.totalorder %v3831_v2, 14 }
  0x98   : > { %2960 = vmatpush.bf16.msk.msrb.mxu3 %vm2959_vm8, %v3682_v4  ;;  %vm1160_vm8 = vcmp.eq.s32.totalorder %v3905_v11, 12  ;;  %vm2963_vm10 = vmpackc.low %vm1385_vm4, %vm1384_vm14  ;;  %vm5035_vm14 = vnez %v5032_v18  ;;  %v3240_v18 = vld [vmem:[#allocation9 + $0x10] sm:$0xff] }
  0x99   : > { %2894 = vmatpush.bf16.msk.msrb.mxu1 %vm2893_vm13, %v3682_v4  ;;  %2866 = vmatpush.bf16.msk.msrb.mxu0 %vm2865_vm6, %v3682_v4  ;;  %vm1238_vm13 = vcmp.eq.s32.totalorder %v3869_v7, 13  ;;  %vm2923_vm11 = vmpackc.low %vm1319_vm2, %vm1318_vm7  ;;  %vm1383_vm6 = vcmp.eq.s32.totalorder %v3908_v12, 15  ;;  %vm1158_vm7 = vcmp.eq.s32.totalorder %v3923_v13, 12  ;;  %vm1159_vm2 = vcmp.eq.s32.totalorder %v3926_v14, 12 }
  0x9a   : > { %2924 = vmatpush.bf16.msk.msrb.mxu2 %vm2923_vm11, %v3682_v4  ;;  %vm4224_vm12 = vmpackc.low %vm1161_vm9, %vm1160_vm8  ;;  %vm1236_vm8 = vcmp.eq.s32.totalorder %v3887_v9, 13  ;;  %vm1237_vm9 = vcmp.eq.s32.totalorder %v3890_v10, 13 }
  0x9b   : > { %v5034_v19 = vsel %vm4224_vm12, 4294967295, %v5033_v19  ;;  %vm2897_vm4 = vmpackc.low %vm1239_vm1, %vm1238_vm13  ;;  %vm1380_vm12 = vcmp.eq.s32.totalorder %v3923_v13, 15 }
  0x9c   : > { %2962 = vmatpush.bf16.msk.msrb.mxu3 %vm2961_vm3, %v3682_v4  ;;  %vm1317_vm3 = vcmp.eq.s32.totalorder %v3838_v3, 14  ;;  %vm4242_vm13 = vmpackc.low %vm1159_vm2, %vm1158_vm7  ;;  %vm5038_vm1 = vnez %v5034_v19  ;;  %vm1234_vm7 = vcmp.eq.s32.totalorder %v3905_v11, 13  ;;  %vm1235_vm2 = vcmp.eq.s32.totalorder %v3908_v12, 13 }
  0x9d   : > { %2896 = vmatpush.bf16.msk.msrb.mxu1 %vm2895_vm15, %v3682_v4  ;;  %2868 = vmatpush.bf16.msk.msrb.mxu0 %vm5035_vm14, %v3682_v4  ;;  %vm2965_vm15 = vmpackc.low %vm1383_vm6, %vm1382_vm0  ;;  %vm1381_vm14 = vcmp.eq.s32.totalorder %v3926_v14, 15  ;;  %v5037_v20 = vsel %vm4242_vm13, 4294967295, %v5036_v20  ;;  %vm1315_vm0 = vcmp.eq.s32.totalorder %v3854_v6, 14  ;;  %vm1378_vm13 = vcmp.eq.s32.totalorder %v3941_v15, 15 }
  0x9e   : > { %vm2925_vm11 = vmpackc.low %vm1317_vm3, %vm1316_vm5  ;;  %vm1156_vm5 = vcmp.eq.s32.totalorder %v3941_v15, 12  ;;  %vm1157_vm3 = vcmp.eq.s32.totalorder %v3944_v16, 12 }
  0x9f   : > { %2926 = vmatpush.bf16.msk.msrb.mxu2 %vm2925_vm11, %v3682_v4  ;;  %vm2899_vm6 = vmpackc.low %vm1237_vm9, %vm1236_vm8  ;;  %vm5041_vm9 = vnez %v5037_v20 }
  0xa0   : > { %2964 = vmatpush.bf16.msk.msrb.mxu3 %vm2963_vm10, %v3682_v4  ;;  %vm1314_vm10 = vcmp.eq.s32.totalorder %v3851_v5, 14  ;;  %vm4260_vm8 = vmpackc.low %vm1157_vm3, %vm1156_vm5  ;;  %vm1232_vm5 = vcmp.eq.s32.totalorder %v3923_v13, 13  ;;  %vm1233_vm3 = vcmp.eq.s32.totalorder %v3926_v14, 13 }
  0xa1   : > { %2898 = vmatpush.bf16.msk.msrb.mxu1 %vm2897_vm4, %v3682_v4  ;;  %2870 = vmatpush.bf16.msk.msrb.mxu0 %vm5038_vm1, %v3682_v4  ;;  %vm2967_vm4 = vmpackc.low %vm1381_vm14, %vm1380_vm12  ;;  %vm1379_vm1 = vcmp.eq.s32.totalorder %v3944_v16, 15  ;;  %vm1466_vm12 = vcmp.eq.s32.totalorder %v3825_v0, 16 }
  0xa2   : > { %vm2927_vm11 = vmpackc.low %vm1315_vm0, %vm1314_vm10  ;;  %vm1312_vm10 = vcmp.eq.s32.totalorder %v3869_v7, 14  ;;  %vm1313_vm0 = vcmp.eq.s32.totalorder %v3872_v8, 14 }
  0xa3   : > { %2928 = vmatpush.bf16.msk.msrb.mxu2 %vm2927_vm11, %v3682_v4  ;;  %vm2901_vm14 = vmpackc.low %vm1235_vm2, %vm1234_vm7  ;;  %vm1465_vm7 = vcmp.eq.s32.totalorder %v3838_v3, 16 }
  0xa4   : > { %2966 = vmatpush.bf16.msk.msrb.mxu3 %vm2965_vm15, %v3682_v4  ;;  %vm1467_vm15 = vcmp.eq.s32.totalorder %v3828_v1, 16  ;;  %vm2929_vm2 = vmpackc.low %vm1313_vm0, %vm1312_vm10  ;;  %vm1462_vm10 = vcmp.eq.s32.totalorder %v3851_v5, 16  ;;  %v4575_v1 = vld [vmem:[#allocation9 + $0x28] sm:$0xff] }
  0xa5   : > { %2900 = vmatpush.bf16.msk.msrb.mxu1 %vm2899_vm6, %v3682_v4  ;;  %2872 = vmatpush.bf16.msk.msrb.mxu0 %vm5041_vm9, %v3682_v4  ;;  %vm4272_vm6 = vmpackc.low %vm1379_vm1, %vm1378_vm13  ;;  %vm1464_vm9 = vcmp.eq.s32.totalorder %v4279_v23, 16  ;;  %vm1310_vm13 = vcmp.eq.s32.totalorder %v3887_v9, 14 }
  0xa6   : > { %vm2987_vm11 = vmpackc.low %vm1467_vm15, %vm1466_vm12  ;;  %vm1230_vm12 = vcmp.eq.s32.totalorder %v3941_v15, 13  ;;  %vm1231_vm15 = vcmp.eq.s32.totalorder %v3944_v16, 13 }
  0xa7   : > { %2930 = vmatpush.bf16.msk.msrb.mxu2 %vm2929_vm2, %v3682_v4  ;;  %vm2903_vm1 = vmpackc.low %vm1233_vm3, %vm1232_vm5  ;;  %vm1540_vm5 = vcmp.eq.s32.totalorder %v4303_v25, 17  ;;  %vm1460_vm2 = vcmp.eq.s32.totalorder %v3869_v7, 16 }
  0xa8   : > { %2968 = vmatpush.bf16.msk.msrb.mxu3 %vm2967_vm4, %v3682_v4  ;;  %vm1311_vm4 = vcmp.eq.s32.totalorder %v3890_v10, 14  ;;  %vm4312_vm3 = vmpackc.low %vm1231_vm15, %vm1230_vm12  ;;  %vm1539_vm12 = vcmp.eq.s32.totalorder %v4331_v29, 17 }
  0xa9   : > { %2902 = vmatpush.bf16.msk.msrb.mxu1 %vm2901_vm14, %v3682_v4  ;;  %2874 = vmatpush.bf16.msk.msrb.mxu0 %vm4260_vm8, %v3682_v4  ;;  %vm4296_vm14 = vmpackc.low %vm1465_vm7, %vm1464_vm9  ;;  %vm1463_vm8 = vcmp.eq.s32.totalorder %v3854_v6, 16  ;;  %vm1309_vm9 = vcmp.eq.s32.totalorder %v3908_v12, 14  ;;  %v4595_v6 = vld [vmem:[#allocation9 + $0x20] sm:$0xff] }
  0xaa   : > { %vm2931_vm0 = vmpackc.low %vm1311_vm4, %vm1310_vm13  ;;  %vm1461_vm13 = vcmp.eq.s32.totalorder %v3872_v8, 16  ;;  %v4614_v8 = vld [vmem:[#allocation9 + $0x18] sm:$0xff] }
  0xab   : > { %2932 = vmatpush.bf16.msk.msrb.mxu2 %vm2931_vm0, %v3682_v4  ;;  %vm4320_vm7 = vmpackc.low %vm1463_vm8, %vm1462_vm10  ;;  %vm1306_vm10 = vcmp.eq.s32.totalorder %v3923_v13, 14  ;;  %vm1307_vm8 = vcmp.eq.s32.totalorder %v3926_v14, 14 }
  0xac   : > { %2970 = vmatpush.bf16.msk.msrb.mxu3 %vm4272_vm6, %v3682_v4  ;;  %vm1541_vm6 = vcmp.eq.s32.totalorder %v4307_v26, 17  ;;  %1220 = vmatmul.bf16.vlgmr.msrb.gmra.mxu0 %v3964_v17  ;;  %vm4339_vm0 = vmpackc.low %vm1461_vm13, %vm1460_vm2  ;;  %vm1304_vm2 = vcmp.eq.s32.totalorder %v3941_v15, 14  ;;  %vm1305_vm13 = vcmp.eq.s32.totalorder %v3944_v16, 14 }
  0xad   : > { %2988 = vmatpush.bf16.msk.msra.mxu0 %vm2987_vm11, %v3682_v4  ;;  %2904 = vmatpush.bf16.msk.msrb.mxu1 %vm2903_vm1, %v3682_v4  ;;  %vm1308_vm11 = vcmp.eq.s32.totalorder %v3905_v11, 14  ;;  %vm3019_vm4 = vmpackc.low %vm1541_vm6, %vm1540_vm5  ;;  %vm1538_vm1 = vcmp.eq.s32.totalorder %v4279_v23, 17  ;;  %vm1459_vm5 = vcmp.eq.s32.totalorder %v3890_v10, 16 }
  0xae   : > { %vm2933_vm15 = vmpackc.low %vm1309_vm9, %vm1308_vm11  ;;  %vm1537_vm11 = vcmp.eq.s32.totalorder %v4356_v33, 17 }
  0xaf   : > { %1442 = vmatmul.bf16.vlgmr.msrb.gmra.mxu3 %v3964_v17  ;;  %2934 = vmatpush.bf16.msk.msrb.mxu2 %vm2933_vm15, %v3682_v4  ;;  %vm4347_vm6 = vmpackc.low %vm1539_vm12, %vm1538_vm1  ;;  %vm1614_vm1 = vcmp.eq.s32.totalorder %v4303_v25, 18  ;;  %vm1615_vm12 = vcmp.eq.s32.totalorder %v4307_v26, 18 }
  0xb0   : > { %vm2935_vm9 = vmpackc.low %vm1307_vm8, %vm1306_vm10  ;;  %vm1457_vm10 = vcmp.eq.s32.totalorder %v3908_v12, 16 }
  0xb1   : > { %2990 = vmatpush.bf16.msk.msra.mxu0 %vm4296_vm14, %v3682_v4  ;;  %2906 = vmatpush.bf16.msk.msrb.mxu1 %vm4312_vm3, %v3682_v4  ;;  %vm1458_vm14 = vcmp.eq.s32.totalorder %v3887_v9, 16  ;;  %vm1536_vm3 = vcmp.eq.s32.totalorder %v4352_v32, 17  ;;  %vm4381_vm8 = vmpackc.low %vm1305_vm13, %vm1304_vm2  ;;  %vm1454_vm2 = vcmp.eq.s32.totalorder %v3923_v13, 16  ;;  %vm1455_vm13 = vcmp.eq.s32.totalorder %v3926_v14, 16 }
  0xb2   : > { %vm4371_vm15 = vmpackc.low %vm1537_vm11, %vm1536_vm3  ;;  %vm1612_vm3 = vcmp.eq.s32.totalorder %v4279_v23, 18  ;;  %vm1613_vm11 = vcmp.eq.s32.totalorder %v4331_v29, 18 }
  0xb3   : > { %2936 = vmatpush.bf16.msk.msrb.mxu2 %vm2935_vm9, %v3682_v4 }
  0xb4   : > { %1294 = vmatmul.bf16.vlgmr.msrb.gmra.mxu1 %v3964_v17 }
  0xb5   : > { %3020 = vmatpush.bf16.msk.msra.mxu1 %vm3019_vm4, %v3682_v4  ;;  %2992 = vmatpush.bf16.msk.msra.mxu0 %vm4320_vm7, %v3682_v4  ;;  %vm4364_vm4 = vmpackc.low %vm1459_vm5, %vm1458_vm14  ;;  %vm1456_vm7 = vcmp.eq.s32.totalorder %v3905_v11, 16  ;;  %vm1534_vm14 = vcmp.eq.s32.totalorder %v4386_v37, 17  ;;  %vm1535_vm5 = vcmp.eq.s32.totalorder %v4390_v38, 17 }
  0xb6   : > { %v5055_v34 = vsel %vm4364_vm4, 4294967295, %v5054_v34  ;;  %vm4402_vm9 = vmpackc.low %vm1457_vm10, %vm1456_vm7  ;;  %vm1610_vm7 = vcmp.eq.s32.totalorder %v4352_v32, 18  ;;  %vm1611_vm10 = vcmp.eq.s32.totalorder %v4356_v33, 18 }
  0xb7   : > { %vm4408_vm4 = vmpackc.low %vm1535_vm5, %vm1534_vm14  ;;  %2938 = vmatpush.bf16.msk.msrb.mxu2 %vm4381_vm8, %v3682_v4  ;;  %vm5068_vm14 = vnez %v5055_v34  ;;  %vm1452_vm8 = vcmp.eq.s32.totalorder %v3941_v15, 16  ;;  %vm1453_vm5 = vcmp.eq.s32.totalorder %v3944_v16, 16 }
  0xb9   : > { %3022 = vmatpush.bf16.msk.msra.mxu1 %vm4347_vm6, %v3682_v4  ;;  %2994 = vmatpush.bf16.msk.msra.mxu0 %vm4339_vm0, %v3682_v4  ;;  %vm4396_vm6 = vmpackc.low %vm1615_vm12, %vm1614_vm1  ;;  %vm1532_vm0 = vcmp.eq.s32.totalorder %v4413_v42, 17  ;;  %vm1533_vm1 = vcmp.eq.s32.totalorder %v4417_v43, 17 }
  0xba   : > { %vm4426_vm12 = vmpackc.low %vm1613_vm11, %vm1612_vm3  ;;  %vm1530_vm11 = vcmp.eq.s32.totalorder %v4449_v47, 17  ;;  %1368 = vmatmul.bf16.vlgmr.msrb.gmra.mxu2 %v3964_v17 }
  0xbb   : > { %3052 = vmatpush.bf16.msk.msra.mxu2 %vm4396_vm6, %v3682_v4  ;;  %vm4444_vm3 = vmpackc.low %vm1533_vm1, %vm1532_vm0  ;;  %vm1531_vm6 = vcmp.eq.s32.totalorder %v4453_v48, 17  ;;  %vm1528_vm1 = vcmp.eq.s32.totalorder %v4471_v51, 17 }
  0xbc   : > { %vm4466_vm0 = vmpackc.low %vm1453_vm5, %vm1452_vm8  ;;  %vm1607_vm8 = vcmp.eq.s32.totalorder %v4417_v43, 18 }
  0xbd   : > { %3024 = vmatpush.bf16.msk.msra.mxu1 %vm4371_vm15, %v3682_v4  ;;  %2996 = vmatpush.bf16.msk.msra.mxu0 %vm5068_vm14, %v3682_v4  ;;  %vm4438_vm15 = vmpackc.low %vm1455_vm13, %vm1454_vm2  ;;  %vm1608_vm13 = vcmp.eq.s32.totalorder %v4386_v37, 18  ;;  %vm1609_vm14 = vcmp.eq.s32.totalorder %v4390_v38, 18  ;;  %v5076_v50 = vsel %vm4466_vm0, 4294967295, %v5075_v50  ;;  %vm1704_vm0 = vcmp.eq.s32.totalorder %v4303_v25, 19 }
  0xbe   : > { %vm4456_vm2 = vmpackc.low %vm1611_vm10, %vm1610_vm7  ;;  %vm1529_vm7 = vcmp.eq.s32.totalorder %v4475_v52, 17  ;;  %vm1606_vm10 = vcmp.eq.s32.totalorder %v4413_v42, 18 }
  0xbf   : > { %3054 = vmatpush.bf16.msk.msra.mxu2 %vm4426_vm12, %v3682_v4  ;;  %vm4492_vm5 = vmpackc.low %vm1609_vm14, %vm1608_vm13 }
  0xc0   : > { %vm4498_vm12 = vmpackc.low %vm1529_vm7, %vm1528_vm1  ;;  %vm1526_vm1 = vcmp.eq.s32.totalorder %v4518_v57, 17 }
  0xc1   : > { %3026 = vmatpush.bf16.msk.msra.mxu1 %vm4408_vm4, %v3682_v4  ;;  %2998 = vmatpush.bf16.msk.msra.mxu0 %vm4402_vm9, %v3682_v4  ;;  %vm4486_vm4 = vmpackc.low %vm1531_vm6, %vm1530_vm11  ;;  %vm1688_vm9 = vcmp.eq.s32.totalorder %v4303_v25, 255  ;;  %vm1689_vm11 = vcmp.eq.s32.totalorder %v4307_v26, 255  ;;  %vm1705_vm6 = vcmp.eq.s32.totalorder %v4307_v26, 19 }
  0xc2   : > { %vm4507_vm13 = vmpackc.low %vm1607_vm8, %vm1606_vm10  ;;  %vm1604_vm10 = vcmp.eq.s32.totalorder %v4449_v47, 18 }
  0xc3   : > { %v5084_v56 = vsel %vm4507_vm13, 4294967295, %v5083_v56  ;;  %3056 = vmatpush.bf16.msk.msra.mxu2 %vm4456_vm2, %v3682_v4  ;;  %vm1720_vm14 = vmor %vm1688_vm9, %vm1704_vm0  ;;  %vm1686_vm13 = vcmp.eq.s32.totalorder %v4279_v23, 255  ;;  %vm1702_vm2 = vcmp.eq.s32.totalorder %v4279_v23, 19  ;;  %vm1687_vm9 = vcmp.eq.s32.totalorder %v4331_v29, 255 }
  0xc4   : > { %vm1721_vm7 = vmor %vm1689_vm11, %vm1705_vm6  ;;  %vm1703_vm11 = vcmp.eq.s32.totalorder %v4331_v29, 19  ;;  %vm5087_vm6 = vnez %v5076_v50 }
  0xc5   : > { %3028 = vmatpush.bf16.msk.msra.mxu1 %vm4444_vm3, %v3682_v4  ;;  %3000 = vmatpush.bf16.msk.msra.mxu0 %vm4438_vm15, %v3682_v4  ;;  %vm1527_vm3 = vcmp.eq.s32.totalorder %v4522_v58, 17  ;;  %vm1605_vm15 = vcmp.eq.s32.totalorder %v4453_v48, 18  ;;  %vm3083_vm8 = vmpackc.low %vm1721_vm7, %vm1720_vm14 }
  0xc6   : > { %3084 = vmatpush.bf16.msk.msra.mxu3 %vm3083_vm8, %v3682_v4  ;;  %vm4535_vm0 = vmpackc.low %vm1527_vm3, %vm1526_vm1  ;;  %vm1602_vm1 = vcmp.eq.s32.totalorder %v4471_v51, 18  ;;  %vm1603_vm3 = vcmp.eq.s32.totalorder %v4475_v52, 18  ;;  %vm1684_vm8 = vcmp.eq.s32.totalorder %v4352_v32, 255 }
  0xc7   : > { %3058 = vmatpush.bf16.msk.msra.mxu2 %vm4492_vm5, %v3682_v4  ;;  %vm4547_vm14 = vmpackc.low %vm1605_vm15, %vm1604_vm10  ;;  %vm1701_vm10 = vcmp.eq.s32.totalorder %v4356_v33, 19  ;;  %vm5090_vm15 = vnez %v5084_v56 }
  0xc8   : > { %vm1719_vm7 = vmor %vm1687_vm9, %vm1703_vm11  ;;  %vm1600_vm9 = vcmp.eq.s32.totalorder %v4518_v57, 18  ;;  %vm1601_vm11 = vcmp.eq.s32.totalorder %v4522_v58, 18 }
  0xc9   : > { %3030 = vmatpush.bf16.msk.msra.mxu1 %vm4486_vm4, %v3682_v4  ;;  %3002 = vmatpush.bf16.msk.msra.mxu0 %vm5087_vm6, %v3682_v4  ;;  %vm1718_vm4 = vmor %vm1686_vm13, %vm1702_vm2  ;;  %vm1700_vm6 = vcmp.eq.s32.totalorder %v4352_v32, 19  ;;  %vm1685_vm13 = vcmp.eq.s32.totalorder %v4356_v33, 255  ;;  %v333_v2 = vpop.f32.mrf.mxu0 }
  0xca   : > { %vm3085_vm5 = vmpackc.low %vm1719_vm7, %vm1718_vm4  ;;  %vm1682_vm7 = vcmp.eq.s32.totalorder %v4386_v37, 255  ;;  %v407_v3 = vpop.f32.mrf.mxu1 }
  0xcb   : > { %3060 = vmatpush.bf16.msk.msra.mxu2 %vm5090_vm15, %v3682_v4  ;;  %3086 = vmatpush.bf16.msk.msra.mxu3 %vm3085_vm5, %v3682_v4  ;;  %vm4570_vm2 = vmpackc.low %vm1603_vm3, %vm1602_vm1  ;;  %vm1698_vm15 = vcmp.eq.s32.totalorder %v4386_v37, 19  ;;  %vm1683_vm3 = vcmp.eq.s32.totalorder %v4390_v38, 255  ;;  %vm1699_vm5 = vcmp.eq.s32.totalorder %v4390_v38, 19 }
  0xcc   : > { %1516 = vmatmul.bf16.vlgmr.msra.gmra.mxu0 %v4558_v63  ;;  %vm1717_vm4 = vmor %vm1685_vm13, %vm1701_vm10  ;;  %vm1696_vm13 = vcmp.eq.s32.totalorder %v4413_v42, 19  ;;  %vm1681_vm10 = vcmp.eq.s32.totalorder %v4417_v43, 255 }
  0xcd   : > { %2004 = vmatpush.bf16.msrb.mxu0 %v4525_v59  ;;  %3032 = vmatpush.bf16.msk.msra.mxu1 %vm4498_vm12, %v3682_v4  ;;  %vm1716_vm12 = vmor %vm1684_vm8, %vm1700_vm6  ;;  %vm1680_vm6 = vcmp.eq.s32.totalorder %v4413_v42, 255 }
  0xce   : > { %vm3087_vm1 = vmpackc.low %vm1717_vm4, %vm1716_vm12  ;;  %vm1697_vm12 = vcmp.eq.s32.totalorder %v4417_v43, 19  ;;  %vm1678_vm4 = vcmp.eq.s32.totalorder %v4449_v47, 255 }
  0xcf   : > { %3062 = vmatpush.bf16.msk.msra.mxu2 %vm4547_vm14, %v3682_v4  ;;  %3088 = vmatpush.bf16.msk.msra.mxu3 %vm3087_vm1, %v3682_v4  ;;  %vm4590_vm8 = vmpackc.low %vm1601_vm11, %vm1600_vm9  ;;  %vm1695_vm1 = vcmp.eq.s32.totalorder %v4453_v48, 19 }
  0xd0   : > { %vm1715_vm14 = vmor %vm1683_vm3, %vm1699_vm5 }
  0xd1   : > { %2005 = vmatpush.bf16.msrb.mxu0 %v4552_v62  ;;  %3034 = vmatpush.bf16.msk.msra.mxu1 %vm4535_vm0, %v3682_v4  ;;  %vm1714_vm0 = vmor %vm1682_vm7, %vm1698_vm15  ;;  %vm1694_vm7 = vcmp.eq.s32.totalorder %v4449_v47, 19  ;;  %v335_v9 = vpop.f32.mrf.mxu0  ;;  %v481_v11 = vpop.f32.mrf.mxu2 }
  0xd2   : > { %vm3089_vm9 = vmpackc.low %vm1715_vm14, %vm1714_vm0  ;;  %v3250_v12 = vpack.c.bf16 %v335_v9, %v333_v2  ;;  %v409_v13 = vpop.f32.mrf.mxu1  ;;  %v555_v14 = vpop.f32.mrf.mxu3  ;;  %vm1676_vm0 = vcmp.eq.s32.totalorder %v4471_v51, 255  ;;  %vm1677_vm14 = vcmp.eq.s32.totalorder %v4475_v52, 255 }
  0xd3   : > { %3064 = vmatpush.bf16.msk.msra.mxu2 %vm4570_vm2, %v3682_v4  ;;  %3090 = vmatpush.bf16.msk.msra.mxu3 %vm3089_vm9, %v3682_v4  ;;  %vm4607_vm11 = vmor %vm1680_vm6, %vm1696_vm13  ;;  %vm1679_vm2 = vcmp.eq.s32.totalorder %v4453_v48, 255  ;;  %vm1692_vm6 = vcmp.eq.s32.totalorder %v4471_v51, 19  ;;  %v3255_v16 = vpack.c.bf16 %v409_v13, %v407_v3  ;;  %vm1674_vm9 = vcmp.eq.s32.totalorder %v4518_v57, 255 }
  0xd4   : > { %1590 = vmatmul.bf16.vlgmr.msra.gmra.mxu1 %v4558_v63  ;;  %vm4616_vm15 = vmor %vm1681_vm10, %vm1697_vm12  ;;  %3251 = vst [vmem:[#allocation2] sm:$0xff] %v3250_v12   ;;  %vm1693_vm10 = vcmp.eq.s32.totalorder %v4475_v52, 19 }
  0xd5   : > { %2006 = vmatpush.bf16.msrb.mxu0 %v4575_v1  ;;  %3366 = vmatpush.bf16.msrb.mxu1 %v4525_v59  ;;  %vm3091_vm3 = vmpackc.low %vm4616_vm15, %vm4607_vm11  ;;  %3347 = vst [vmem:[#allocation2 + $0x38] sm:$0xff] %v3255_v16   ;;  %vm1690_vm11 = vcmp.eq.s32.totalorder %v4518_v57, 19  ;;  %vm1691_vm15 = vcmp.eq.s32.totalorder %v4522_v58, 19 }
  0xd6   : > { %vm4627_vm5 = vmor %vm1678_vm4, %vm1694_vm7  ;;  %vm1675_vm7 = vcmp.eq.s32.totalorder %v4522_v58, 255 }
  0xd7   : > { %3066 = vmatpush.bf16.msk.msra.mxu2 %vm4590_vm8, %v3682_v4  ;;  %3092 = vmatpush.bf16.msk.msra.mxu3 %vm3091_vm3, %v3682_v4  ;;  %vm4639_vm13 = vmor %vm1679_vm2, %vm1695_vm1 }
  0xd8   : > { %vm3093_vm8 = vmpackc.low %vm4639_vm13, %vm4627_vm5 }
  0xd9   : > { %2007 = vmatpush.bf16.msrb.mxu0 %v4595_v6  ;;  %3369 = vmatpush.bf16.msrb.mxu1 %v4552_v62  ;;  %vm4651_vm12 = vmor %vm1676_vm0, %vm1692_vm6  ;;  %v483_v23 = vpop.f32.mrf.mxu2 }
  0xda   : > { %1664 = vmatmul.bf16.vlgmr.msra.gmra.mxu2 %v4558_v63  ;;  %vm4659_vm4 = vmor %vm1677_vm14, %vm1693_vm10  ;;  %v3260_v24 = vpack.c.bf16 %v483_v23, %v481_v11  ;;  %v557_v25 = vpop.f32.mrf.mxu3 }
  0xdb   : > { %3367 = vmatpush.bf16.msrb.mxu2 %v4525_v59  ;;  %3094 = vmatpush.bf16.msk.msra.mxu3 %vm3093_vm8, %v3682_v4  ;;  %vm3095_vm2 = vmpackc.low %vm4659_vm4, %vm4651_vm12  ;;  %v3265_v26 = vpack.c.bf16 %v557_v25, %v555_v14  ;;  %v3218_v28 = vld [vmem:[#allocation2] sm:$0xff] }
  0xdc   : > { %vm4670_vm1 = vmor %vm1674_vm9, %vm1690_vm11  ;;  %3348 = vst [vmem:[#allocation2 + $0x50] sm:$0xff] %v3260_v24  }
  0xdd   : > { %2008 = vmatpush.bf16.msrb.mxu0 %v4614_v8  ;;  %3372 = vmatpush.bf16.msrb.mxu1 %v4575_v1  ;;  %vm1707_vm3 = vmor %vm1675_vm7, %vm1691_vm15  ;;  %3349 = vst [vmem:[#allocation2 + $0x18] sm:$0xff] %v3265_v26  }
  0xde   : > { %vm3097_vm5 = vmpackc.low %vm1707_vm3, %vm4670_vm1 }
  0xdf   : > { %3370 = vmatpush.bf16.msrb.mxu2 %v4552_v62  ;;  %3096 = vmatpush.bf16.msk.msra.mxu3 %vm3095_vm2, %v3682_v4 }
  0xe1   : > { %2009 = vmatpush.bf16.msrb.mxu0 %v3240_v18  ;;  %3375 = vmatpush.bf16.msrb.mxu1 %v4595_v6 }
  0xe3   : > { %3373 = vmatpush.bf16.msrb.mxu2 %v4575_v1  ;;  %3098 = vmatpush.bf16.msk.msra.mxu3 %vm3097_vm5, %v3682_v4  ;;  %v3219_v4 = vld [vmem:[#allocation2 + $0x38] sm:$0xff]  ;;  %v3220_v42 = vld [vmem:[#allocation2 + $0x50] sm:$0xff] }
  0xe4   : > { %v3221_v48 = vld [vmem:[#allocation2 + $0x18] sm:$0xff] }
  0xe5   : > { %2010 = vmatpush.bf16.msrb.mxu0 %v3239_v21  ;;  %3378 = vmatpush.bf16.msrb.mxu1 %v4614_v8 }
  0xe6   : > { %1770 = vmatmul.bf16.vlgmr.msra.gmra.mxu3 %v4558_v63 }
  0xe7   : > { %3376 = vmatpush.bf16.msrb.mxu2 %v4595_v6  ;;  %3368 = vmatpush.bf16.msrb.mxu3 %v4525_v59 }
  0xe9   : > { %2011 = vmatpush.bf16.msrb.mxu0 %v3238_v27  ;;  %3381 = vmatpush.bf16.msrb.mxu1 %v3240_v18  ;;  %v629_v29 = vpop.f32.mrf.mxu0 }
  0xea   : > { %v703_v30 = vpop.f32.mrf.mxu1 }
  0xeb   : > { %3379 = vmatpush.bf16.msrb.mxu2 %v4614_v8  ;;  %3371 = vmatpush.bf16.msrb.mxu3 %v4552_v62 }
  0xec   : > { %2012 = vmatmul.bf16.vlgmr.msrb.gmra.mxu0 %v3218_v28 }
  0xed   : > { %3384 = vmatpush.bf16.msrb.mxu1 %v3239_v21 }
  0xef   : > { %3382 = vmatpush.bf16.msrb.mxu2 %v3240_v18  ;;  %3374 = vmatpush.bf16.msrb.mxu3 %v4575_v1 }
  0xf1   : > { %3387 = vmatpush.bf16.msrb.mxu1 %v3238_v27  ;;  %v631_v31 = vpop.f32.mrf.mxu0  ;;  %v777_v33 = vpop.f32.mrf.mxu2 }
  0xf2   : > { %v705_v32 = vpop.f32.mrf.mxu1  ;;  %v3270_v34 = vpack.c.bf16 %v631_v31, %v629_v29  ;;  %v851_v36 = vpop.f32.mrf.mxu3 }
  0xf3   : > { %3385 = vmatpush.bf16.msrb.mxu2 %v3239_v21  ;;  %3377 = vmatpush.bf16.msrb.mxu3 %v4595_v6  ;;  %v3275_v35 = vpack.c.bf16 %v705_v32, %v703_v30 }
  0xf4   : > { %3350 = vst [vmem:[#allocation2 + $0x30] sm:$0xff] %v3270_v34  }
  0xf5   : > { %3351 = vst [vmem:[#allocation2 + $0x68] sm:$0xff] %v3275_v35  }
  0xf7   : > { %3388 = vmatpush.bf16.msrb.mxu2 %v3238_v27  ;;  %3380 = vmatpush.bf16.msrb.mxu3 %v4614_v8 }
  0xf9   : > { %v779_v37 = vpop.f32.mrf.mxu2 }
  0xfa   : > { %v3280_v38 = vpack.c.bf16 %v779_v37, %v777_v33  ;;  %v853_v39 = vpop.f32.mrf.mxu3 }
  0xfb   : > { %3383 = vmatpush.bf16.msrb.mxu3 %v3240_v18  ;;  %v3285_v41 = vpack.c.bf16 %v853_v39, %v851_v36  ;;  %v3222_v58 = vld [vmem:[#allocation2 + $0x30] sm:$0xff] }
  0xfc   : > { %2017 = vmatmul.bf16.gmra.mxu0 %v3219_v4  ;;  %v3223_v40 = vld [vmem:[#allocation2 + $0x68] sm:$0xff]  ;;  %3352 = vst [vmem:[#allocation2 + $0x78] sm:$0xff] %v3280_v38  }
  0xfd   : > { %2037 = vmatmul.bf16.vlgmr.msrb.gmra.mxu1 %v3223_v40  ;;  %3353 = vst [vmem:[#allocation2 + $0x80] sm:$0xff] %v3285_v41  }
  0xff   : > { %3386 = vmatpush.bf16.msrb.mxu3 %v3239_v21 }
 0x103   : > { %3389 = vmatpush.bf16.msrb.mxu3 %v3238_v27  ;;  %v3224_v44 = vld [vmem:[#allocation2 + $0x78] sm:$0xff] }
 0x104   : > { %v3225_v54 = vld [vmem:[#allocation2 + $0x80] sm:$0xff] }
 0x109   : > { %v925_v43 = vpop.f32.mrf.mxu0 }
 0x10c   : > { %2022 = vmatmul.bf16.gmra.mxu0 %v3220_v42 }
 0x10d   : > { %2042 = vmatmul.bf16.gmra.mxu1 %v3224_v44 }
 0x111   : > { %v1073_v45 = vpop.f32.mrf.mxu2  ;;  %v927_v47 = vpop.f32.mrf.mxu0 }
 0x112   : > { %v1147_v46 = vpop.f32.mrf.mxu3  ;;  %v3290_v49 = vpack.c.bf16 %v927_v47, %v925_v43  ;;  %v999_v50 = vpop.f32.mrf.mxu1 }
 0x114   : > { %3354 = vst [vmem:[#allocation2 + $0x8] sm:$0xff] %v3290_v49  }
 0x119   : > { %v1075_v51 = vpop.f32.mrf.mxu2 }
 0x11a   : > { %v3300_v52 = vpack.c.bf16 %v1075_v51, %v1073_v45  ;;  %v1149_v53 = vpop.f32.mrf.mxu3  ;;  %v1001_v56 = vpop.f32.mrf.mxu1 }
 0x11b   : > { %v3305_v55 = vpack.c.bf16 %v1149_v53, %v1147_v46  ;;  %v3295_v57 = vpack.c.bf16 %v1001_v56, %v999_v50  ;;  %v3226_v61 = vld [vmem:[#allocation2 + $0x8] sm:$0xff] }
 0x11c   : > { %2027 = vmatmul.bf16.gmra.mxu0 %v3221_v48  ;;  %3356 = vst [vmem:[#allocation2 + $0x28] sm:$0xff] %v3300_v52  }
 0x11d   : > { %3357 = vst [vmem:[#allocation2 + $0x40] sm:$0xff] %v3305_v55   ;;  %2047 = vmatmul.bf16.gmra.mxu1 %v3225_v54 }
 0x11e   : > { %3355 = vst [vmem:[#allocation2 + $0x88] sm:$0xff] %v3295_v57  }
 0x123   : > { %v3228_v59 = vld [vmem:[#allocation2 + $0x28] sm:$0xff] }
 0x124   : > { %2062 = vmatmul.bf16.vlgmr.msrb.gmra.mxu2 %v3228_v59  ;;  %v3229_v2 = vld [vmem:[#allocation2 + $0x40] sm:$0xff] }
 0x125   : > { %v3227_v8 = vld [vmem:[#allocation2 + $0x88] sm:$0xff] }
 0x129   : > { %v1221_v60 = vpop.f32.mrf.mxu0 }
 0x12c   : > { %2032 = vmatmul.bf16.gmra.mxu0 %v3222_v58 }
 0x12d   : > { %2052 = vmatmul.bf16.gmra.mxu1 %v3226_v61 }
 0x131   : > { %v1295_v63 = vpop.f32.mrf.mxu1  ;;  %v1223_v0 = vpop.f32.mrf.mxu0 }
 0x132   : > { %v1443_v62 = vpop.f32.mrf.mxu3  ;;  %v3310_v1 = vpack.c.bf16 %v1223_v0, %v1221_v60 }
 0x134   : > { %3358 = vst [vmem:[#allocation2 + $0x58] sm:$0xff] %v3310_v1   ;;  %2067 = vmatmul.bf16.gmra.mxu2 %v3229_v2 }
 0x139   : > { %v1297_v5 = vpop.f32.mrf.mxu1 }
 0x13a   : > { %v1445_v3 = vpop.f32.mrf.mxu3  ;;  %v3315_v7 = vpack.c.bf16 %v1297_v5, %v1295_v63 }
 0x13b   : > { %v3325_v6 = vpack.c.bf16 %v1445_v3, %v1443_v62  ;;  %v3230_v11 = vld [vmem:[#allocation2 + $0x58] sm:$0xff] }
 0x13c   : > { %3359 = vst [vmem:[#allocation2 + $0x10] sm:$0xff] %v3315_v7  }
 0x13d   : > { %3361 = vst [vmem:[#allocation2 + $0x60] sm:$0xff] %v3325_v6   ;;  %v1369_v9 = vpop.f32.mrf.mxu2  ;;  %2057 = vmatmul.bf16.gmra.mxu1 %v3227_v8 }
 0x143   : > { %v3231_v18 = vld [vmem:[#allocation2 + $0x10] sm:$0xff] }
 0x144   : > { %v3233_v10 = vld [vmem:[#allocation2 + $0x60] sm:$0xff]  ;;  %2072 = vmatmul.bf16.gmra.mxu2 %v3230_v11 }
 0x145   : > { %2087 = vmatmul.bf16.vlgmr.msrb.gmra.mxu3 %v3233_v10  ;;  %v1371_v13 = vpop.f32.mrf.mxu2 }
 0x146   : > { %v3320_v14 = vpack.c.bf16 %v1371_v13, %v1369_v9 }
 0x148   : > { %3360 = vst [vmem:[#allocation2 + $0x98] sm:$0xff] %v3320_v14  }
 0x149   : > { %v1517_v12 = vpop.f32.mrf.mxu0 }
 0x14f   : > { %v3232_v24 = vld [vmem:[#allocation2 + $0x98] sm:$0xff] }
 0x151   : > { %v1591_v15 = vpop.f32.mrf.mxu1  ;;  %v1519_v16 = vpop.f32.mrf.mxu0 }
 0x152   : > { %v3330_v17 = vpack.c.bf16 %v1519_v16, %v1517_v12 }
 0x154   : > { %3362 = vst [vmem:[#allocation2 + $0x20] sm:$0xff] %v3330_v17   ;;  %2077 = vmatmul.bf16.gmra.mxu2 %v3231_v18 }
 0x159   : > { %v1593_v19 = vpop.f32.mrf.mxu1 }
 0x15a   : > { %v3335_v20 = vpack.c.bf16 %v1593_v19, %v1591_v15 }
 0x15b   : > { %v3234_v21 = vld [vmem:[#allocation2 + $0x20] sm:$0xff] }
 0x15c   : > { %3363 = vst [vmem:[#allocation2 + $0x48] sm:$0xff] %v3335_v20   ;;  %2092 = vmatmul.bf16.gmra.mxu3 %v3234_v21  ;;  %v3683_v20 = vmov 0  }
 0x15d   : > { %v1665_v22 = vpop.f32.mrf.mxu2 }
 0x163   : > { %v3235_v26 = vld [vmem:[#allocation2 + $0x48] sm:$0xff] }
 0x164   : > { %2082 = vmatmul.bf16.gmra.mxu2 %v3232_v24 }
 0x165   : > { %v1667_v23 = vpop.f32.mrf.mxu2 }
 0x166   : > { %v3340_v25 = vpack.c.bf16 %v1667_v23, %v1665_v22 }
 0x168   : > { %3364 = vst [vmem:[#allocation2 + $0x70] sm:$0xff] %v3340_v25  }
 0x169   : > { %v1771_v27 = vpop.f32.mrf.mxu3  ;;  %v4690_v28 = vpop.f32.mrf.mxu0 }
 0x16c   : > { %2097 = vmatmul.bf16.gmra.mxu3 %v3235_v26 }
 0x16f   : > { %v3236_v31 = vld [vmem:[#allocation2 + $0x70] sm:$0xff] }
 0x171   : > { %v1773_v29 = vpop.f32.mrf.mxu3  ;;  %v4692_v4 = vpop.f32.mrf.mxu0 }
 0x172   : > { %v3345_v30 = vpack.c.bf16 %v1773_v29, %v1771_v27 }
 0x174   : > { %3365 = vst [vmem:[#allocation2 + $0x90] sm:$0xff] %v3345_v30  }
 0x179   : > { %v4694_v32 = vpop.f32.mrf.mxu0 }
 0x17a   : > { %v4696_v33 = vpop.f32.mrf.mxu1  ;;  %vm2157_vm0 = vcmp.gt.f32.partialorder %v4694_v32, %v4690_v28 }
 0x17b   : > { %v3237_v34 = vld [vmem:[#allocation2 + $0x90] sm:$0xff]  ;;  %v4727_v46 = vsel %vm2157_vm0, %v4694_v32, %v4690_v28  ;;  %v2159_v21 = vsel %vm2157_vm0, 1, %v3683_v20 }
 0x17c   : > { %2102 = vmatmul.bf16.gmra.mxu3 %v3236_v31 }
 0x181   : > { %v4698_v35 = vpop.f32.mrf.mxu0 }
 0x182   : > { %v4700_v36 = vpop.f32.mrf.mxu1  ;;  %vm2158_vm13 = vcmp.gt.f32.partialorder %v4698_v35, %v4692_v4 }
 0x183   : > { %v4748_v51 = vsel %vm2158_vm13, %v4698_v35, %v4692_v4  ;;  %v2160_v32 = vsel %vm2158_vm13, 1, %v3683_v20 }
 0x189   : > { %v4702_v37 = vpop.f32.mrf.mxu0 }
 0x18a   : > { %v4704_v38 = vpop.f32.mrf.mxu1  ;;  %vm2165_vm6 = vcmp.gt.f32.partialorder %v4702_v37, %v4727_v46 }
 0x18b   : > { %v2169_v49 = vsel %vm2165_vm6, %v4702_v37, %v4727_v46  ;;  %v2167_v24 = vsel %vm2165_vm6, 2, %v2159_v21 }
 0x18c   : > { %2107 = vmatmul.bf16.gmra.mxu3 %v3237_v34 }
 0x191   : > { %v4706_v39 = vpop.f32.mrf.mxu0 }
 0x192   : > { %v4708_v40 = vpop.f32.mrf.mxu1  ;;  %vm2166_vm10 = vcmp.gt.f32.partialorder %v4706_v39, %v4748_v51 }
 0x193   : > { %v4764_v55 = vsel %vm2166_vm10, %v4706_v39, %v4748_v51 }
 0x199   : > { %v4710_v41 = vpop.f32.mrf.mxu0 }
 0x19a   : > { %v4714_v43 = vpop.f32.mrf.mxu1  ;;  %vm2173_vm14 = vcmp.gt.f32.partialorder %v4710_v41, %v2169_v49 }
 0x19b   : > { %v2177_v52 = vsel %vm2173_vm14, %v4710_v41, %v2169_v49  ;;  %v2175_v25 = vsel %vm2173_vm14, 3, %v2167_v24 }
 0x1a1   : > { %v4718_v45 = vpop.f32.mrf.mxu0 }
 0x1a2   : > { %v4729_v47 = vpop.f32.mrf.mxu1  ;;  %vm2174_vm12 = vcmp.gt.f32.partialorder %v4718_v45, %v4764_v55 }
 0x1a3   : > { %v4777_v58 = vsel %vm2174_vm12, %v4718_v45, %v4764_v55 }
 0x1a7   : > { %v4712_v42 = vpop.f32.mrf.mxu2 }
 0x1a9   : > { %v2033_v50 = vpop.f32.mrf.mxu0 }
 0x1aa   : > { %vm2181_vm8 = vcmp.gt.f32.partialorder %v2033_v50, %v2177_v52  ;;  %v4757_v54 = vpop.f32.mrf.mxu1 }
 0x1ab   : > { %v2185_v56 = vsel %vm2181_vm8, %v2033_v50, %v2177_v52  ;;  %v2183_v28 = vsel %vm2181_vm8, 4, %v2175_v25 }
 0x1ac   : > { %vm2189_vm9 = vcmp.gt.f32.partialorder %v4696_v33, %v2185_v56 }
 0x1ad   : > { %v2193_v60 = vsel %vm2189_vm9, %v4696_v33, %v2185_v56  ;;  %v2191_v29 = vsel %vm2189_vm9, 5, %v2183_v28  ;;  %v2168_v33 = vsel %vm2166_vm10, 2, %v2160_v32 }
 0x1ae   : > { %vm2197_vm4 = vcmp.gt.f32.partialorder %v4704_v38, %v2193_v60  ;;  %v2176_v41 = vsel %vm2174_vm12, 3, %v2168_v33 }
 0x1af   : > { %v4716_v44 = vpop.f32.mrf.mxu2  ;;  %v2201_v0 = vsel %vm2197_vm4, %v4704_v38, %v2193_v60  ;;  %v2199_v37 = vsel %vm2197_vm4, 6, %v2191_v29 }
 0x1b0   : > { %vm2205_vm15 = vcmp.gt.f32.partialorder %v4714_v43, %v2201_v0 }
 0x1b1   : > { %v4769_v57 = vpop.f32.mrf.mxu0  ;;  %v2209_v5 = vsel %vm2205_vm15, %v4714_v43, %v2201_v0  ;;  %v2207_v38 = vsel %vm2205_vm15, 7, %v2199_v37 }
 0x1b2   : > { %vm2182_vm11 = vcmp.gt.f32.partialorder %v4769_v57, %v4777_v58  ;;  %v4795_v63 = vpop.f32.mrf.mxu1  ;;  %vm5017_vm1 = vcmp.gt.f32.partialorder %v4757_v54, %v2209_v5  ;;  %vm5109_vm10 = vcmp.gt.f32.partialorder %v4757_v54, %v2209_v5 }
 0x1b3   : > { %v4793_v62 = vsel %vm2182_vm11, %v4769_v57, %v4777_v58  ;;  %v2217_v8 = vsel %vm5017_vm1, %v4757_v54, %v2209_v5  ;;  %v2184_v35 = vsel %vm2182_vm11, 4, %v2176_v41  ;;  %v2215_v45 = vsel %vm5109_vm10, 8, %v2207_v38 }
 0x1b4   : > { %vm5015_vm7 = vcmp.gt.f32.partialorder %v4700_v36, %v4793_v62  ;;  %vm5110_vm12 = vcmp.gt.f32.partialorder %v4700_v36, %v4793_v62 }
 0x1b5   : > { %v4810_v2 = vsel %vm5015_vm7, %v4700_v36, %v4793_v62  ;;  %v2192_v49 = vsel %vm5110_vm12, 5, %v2184_v35 }
 0x1b6   : > { %vm5016_vm2 = vcmp.gt.f32.partialorder %v4708_v40, %v4810_v2  ;;  %vm5112_vm4 = vcmp.gt.f32.partialorder %v4708_v40, %v4810_v2 }
 0x1b7   : > { %v4731_v48 = vpop.f32.mrf.mxu2  ;;  %v2202_v7 = vsel %vm5016_vm2, %v4708_v40, %v4810_v2  ;;  %v2200_v54 = vsel %vm5112_vm4, 6, %v2192_v49 }
 0x1b8   : > { %vm5018_vm3 = vcmp.gt.f32.partialorder %v4729_v47, %v2202_v7  ;;  %vm5113_vm10 = vcmp.gt.f32.partialorder %v4729_v47, %v2202_v7 }
 0x1b9   : > { %v2210_v11 = vsel %vm5018_vm3, %v4729_v47, %v2202_v7  ;;  %v2208_v56 = vsel %vm5113_vm10, 7, %v2200_v54 }
 0x1ba   : > { %v2058_v6 = vpop.f32.mrf.mxu1  ;;  %vm5020_vm7 = vcmp.gt.f32.partialorder %v4795_v63, %v2210_v11  ;;  %vm5114_vm12 = vcmp.gt.f32.partialorder %v4795_v63, %v2210_v11 }
 0x1bb   : > { %vm5019_vm5 = vcmp.gt.f32.partialorder %v2058_v6, %v2217_v8  ;;  %v2218_v14 = vsel %vm5020_vm7, %v4795_v63, %v2210_v11  ;;  %vm5111_vm9 = vcmp.gt.f32.partialorder %v2058_v6, %v2217_v8  ;;  %v2216_v58 = vsel %vm5114_vm12, 8, %v2208_v56 }
 0x1bc   : > { %v2225_v12 = vsel %vm5019_vm5, %v2058_v6, %v2217_v8  ;;  %v2223_v50 = vsel %vm5111_vm9, 9, %v2215_v45 }
 0x1bd   : > { %vm2229_vm2 = vcmp.gt.f32.partialorder %v4712_v42, %v2225_v12 }
 0x1be   : > { %v2233_v15 = vsel %vm2229_vm2, %v4712_v42, %v2225_v12  ;;  %v2231_v36 = vsel %vm2229_vm2, 10, %v2223_v50 }
 0x1bf   : > { %v4753_v53 = vpop.f32.mrf.mxu2  ;;  %vm2237_vm3 = vcmp.gt.f32.partialorder %v4731_v48, %v2233_v15 }
 0x1c0   : > { %v2241_v19 = vsel %vm2237_vm3, %v4731_v48, %v2233_v15  ;;  %v2239_v57 = vsel %vm2237_vm3, 11, %v2231_v36 }
 0x1c2   : > { %v2060_v13 = vpop.f32.mrf.mxu1 }
 0x1c3   : > { %vm5021_vm1 = vcmp.gt.f32.partialorder %v2060_v13, %v2218_v14  ;;  %vm5115_vm4 = vcmp.gt.f32.partialorder %v2060_v13, %v2218_v14 }
 0x1c4   : > { %v2226_v18 = vsel %vm5021_vm1, %v2060_v13, %v2218_v14  ;;  %v2224_v42 = vsel %vm5115_vm4, 9, %v2216_v58 }
 0x1c5   : > { %vm2230_vm5 = vcmp.gt.f32.partialorder %v4716_v44, %v2226_v18 }
 0x1c6   : > { %v2234_v22 = vsel %vm2230_vm5, %v4716_v44, %v2226_v18  ;;  %v2232_v63 = vsel %vm2230_vm5, 10, %v2224_v42 }
 0x1c7   : > { %v4779_v59 = vpop.f32.mrf.mxu2  ;;  %vm2238_vm0 = vcmp.gt.f32.partialorder %v4753_v53, %v2234_v22 }
 0x1c8   : > { %v4786_v61 = vpop.f32.mrf.mxu3  ;;  %vm2245_vm7 = vcmp.gt.f32.partialorder %v4779_v59, %v2241_v19  ;;  %v2242_v30 = vsel %vm2238_vm0, %v4753_v53, %v2234_v22  ;;  %v2240_v2 = vsel %vm2238_vm0, 11, %v2232_v63 }
 0x1c9   : > { %v2249_v26 = vsel %vm2245_vm7, %v4779_v59, %v2241_v19  ;;  %v2247_v40 = vsel %vm2245_vm7, 12, %v2239_v57 }
 0x1cf   : > { %v4803_v1 = vpop.f32.mrf.mxu2 }
 0x1d0   : > { %v4813_v3 = vpop.f32.mrf.mxu3  ;;  %vm2246_vm6 = vcmp.gt.f32.partialorder %v4803_v1, %v2242_v30 }
 0x1d1   : > { %v2250_v46 = vsel %vm2246_vm6, %v4803_v1, %v2242_v30  ;;  %v2248_v6 = vsel %vm2246_vm6, 12, %v2240_v2 }
 0x1d7   : > { %v4829_v9 = vpop.f32.mrf.mxu2 }
 0x1d8   : > { %vm2253_vm1 = vcmp.gt.f32.partialorder %v4829_v9, %v2249_v26 }
 0x1d9   : > { %v2257_v31 = vsel %vm2253_vm1, %v4829_v9, %v2249_v26  ;;  %v2255_v60 = vsel %vm2253_vm1, 13, %v2247_v40 }
 0x1df   : > { %v4832_v10 = vpop.f32.mrf.mxu3  ;;  %v4846_v16 = vpop.f32.mrf.mxu2 }
 0x1e0   : > { %vm2254_vm13 = vcmp.gt.f32.partialorder %v4846_v16, %v2250_v46 }
 0x1e1   : > { %v2258_v51 = vsel %vm2254_vm13, %v4846_v16, %v2250_v46  ;;  %v2256_v44 = vsel %vm2254_vm13, 13, %v2248_v6 }
 0x1e7   : > { %v4848_v17 = vpop.f32.mrf.mxu3  ;;  %v2083_v27 = vpop.f32.mrf.mxu2 }
 0x1e8   : > { %vm2261_vm14 = vcmp.gt.f32.partialorder %v2083_v27, %v2257_v31 }
 0x1e9   : > { %v2265_v4 = vsel %vm2261_vm14, %v2083_v27, %v2257_v31  ;;  %v2263_v48 = vsel %vm2261_vm14, 14, %v2255_v60 }
 0x1ea   : > { %vm2269_vm8 = vcmp.gt.f32.partialorder %v4786_v61, %v2265_v4 }
 0x1eb   : > { %v2273_v43 = vsel %vm2269_vm8, %v4786_v61, %v2265_v4  ;;  %v2271_v0 = vsel %vm2269_vm8, 15, %v2263_v48 }
 0x1ec   : > { %vm2277_vm15 = vcmp.gt.f32.partialorder %v4832_v10, %v2273_v43 }
 0x1ed   : > { %v2281_v47 = vsel %vm2277_vm15, %v4832_v10, %v2273_v43  ;;  %v2279_v7 = vsel %vm2277_vm15, 16, %v2271_v0 }
 0x1ef   : > { %v2098_v23 = vpop.f32.mrf.mxu3  ;;  %v2085_v39 = vpop.f32.mrf.mxu2 }
 0x1f0   : > { %vm2262_vm11 = vcmp.gt.f32.partialorder %v2085_v39, %v2258_v51  ;;  %vm2285_vm7 = vcmp.gt.f32.partialorder %v2098_v23, %v2281_v47 }
 0x1f1   : > { %v2266_v55 = vsel %vm2262_vm11, %v2085_v39, %v2258_v51  ;;  %v2289_v5 = vsel %vm2285_vm7, %v2098_v23, %v2281_v47  ;;  %v2264_v8 = vsel %vm2262_vm11, 14, %v2256_v44  ;;  %v2287_v53 = vsel %vm2285_vm7, 17, %v2279_v7 }
 0x1f2   : > { %vm2270_vm9 = vcmp.gt.f32.partialorder %v4813_v3, %v2266_v55 }
 0x1f3   : > { %v2274_v62 = vsel %vm2270_vm9, %v4813_v3, %v2266_v55  ;;  %v2272_v10 = vsel %vm2270_vm9, 15, %v2264_v8 }
 0x1f4   : > { %vm2278_vm2 = vcmp.gt.f32.partialorder %v4848_v17, %v2274_v62 }
 0x1f5   : > { %v2282_v61 = vsel %vm2278_vm2, %v4848_v17, %v2274_v62  ;;  %v2280_v16 = vsel %vm2278_vm2, 16, %v2272_v10 }
 0x1f7   : > { %v4886_v34 = vpop.f32.mrf.mxu3 }
 0x1f8   : > { %vm2286_vm3 = vcmp.gt.f32.partialorder %v4886_v34, %v2282_v61 }
 0x1f9   : > { %v2290_v14 = vsel %vm2286_vm3, %v4886_v34, %v2282_v61  ;;  %v2288_v3 = vsel %vm2286_vm3, 17, %v2280_v16 }
 0x1ff   : > { %v2103_v52 = vpop.f32.mrf.mxu3 }
 0x200   : > { %vm2293_vm1 = vcmp.gt.f32.partialorder %v2103_v52, %v2289_v5 }
 0x201   : > { %v2297_v9 = vsel %vm2293_vm1, %v2103_v52, %v2289_v5  ;;  %v2295_v1 = vsel %vm2293_vm1, 18, %v2287_v53 }
 0x207   : > { %v2105_v59 = vpop.f32.mrf.mxu3 }
 0x208   : > { %vm2294_vm14 = vcmp.gt.f32.partialorder %v2105_v59, %v2290_v14 }
 0x209   : > { %v2298_v20 = vsel %vm2294_vm14, %v2105_v59, %v2290_v14  ;;  %v2296_v21 = vsel %vm2294_vm14, 18, %v2288_v3 }
 0x20f   : > { %v2108_v11 = vpop.f32.mrf.mxu3 }
 0x210   : > { %vm2301_vm5 = vcmp.gt.f32.partialorder %v2108_v11, %v2297_v9 }
 0x211   : > { %v2303_v12 = vsel %vm2301_vm5, 19, %v2295_v1  ;;  %v2305_v13 = vsel %vm2301_vm5, %v2108_v11, %v2297_v9 }
 0x212   : > { %vm2307_vm0 = vcmp.eq.s32.totalorder %v2303_v12, 19  ;;  %vm2311_vm6 = vcmp.lt.f32.partialorder %v2305_v13, 48.0 }
 0x213   : > { %v2309_v15 = vsel %vm2307_vm0, 255, %v2303_v12 }
 0x214   : > { %v2313_v18 = vsel %vm2311_vm6, 255, %v2309_v15 }
 0x215   : > { %2315 = vst [vmem:[%s241_s25] sm:$0xff] %v2313_v18 }
 0x217   : > { %v2110_v19 = vpop.f32.mrf.mxu3 }
 0x218   : > { %vm2302_vm13 = vcmp.gt.f32.partialorder %v2110_v19, %v2298_v20 }
 0x219   : > { %v2304_v17 = vsel %vm2302_vm13, 19, %v2296_v21  ;;  %v2306_v22 = vsel %vm2302_vm13, %v2110_v19, %v2298_v20 }
 0x21a   : > { %vm2308_vm8 = vcmp.eq.s32.totalorder %v2304_v17, 19  ;;  %vm2312_vm11 = vcmp.lt.f32.partialorder %v2306_v22, 48.0 }
 0x21b   : > { %v2310_v23 = vsel %vm2308_vm8, 255, %v2304_v17 }
 0x21c   : > { %v2314_v24 = vsel %vm2312_vm11, 255, %v2310_v23 }
 0x21d   : > { %2316 = vst [vmem:[%s241_s25 + $0x8] sm:$0xff] %v2314_v24 }
 0x21e   : > { %3615 = shalt.err (!%p3612_p0)
}
 0x21f   : > { %s3684_s11 = smov 128   ;;  %s3685_s26 = smov 8  }
 0x220   : > { %3400 = dma.vmem_to_hbm [thread:$0]  (%p3789_p7), %s2333_s30, 256, %s2335_s15, %s2318_s4, %s3684_s11, %s3684_s11, %s3685_s26  }
 0x221 PF: > { %s2349_s28 = sand.u32 1, %s3654_s12   ;;  %p3414_p3 = pnand %p2446_p11, %p3755_p6 }
 0x222   : > { %s2350_s1 = scalar_lea.sflag [#allocation6], %s2349_s28 }
 0x223   : > { %p3415_p5 = pneg %p3414_p3 }
 0x225   : > { %3649 = dma.done.wait (%p3415_p5), %s2350_s1, 256  }
 0x226   : > { %3651 = vsyncadd (%p3415_p5), %s2350_s1, 4294967040  ;;  %s20_s17 = sadd.s32 1, %s3674_s17   ;;  %s5116_s12 = smov %s3658_s13 }
 0x227   : > { %p17_p9 = scmp.ge.s32.totalorder %s20_s17, 4   ;;  %s5117_s13 = smov %s3662_s14 }
 0x228   : > { %s5118_s14 = smov %s3798_s29  ;;  %s5119_s15 = smov %s3670_s16 }
 0x229   : > { %s5120_s16 = smov %s5122_s10  ;;  %19 = sbr.rel (!%p17_p9) target bundleno = 9 (0x9), region = 85 }
 0x22e   :  { %2356 = vsyncpa [#allocation5], 1 }
 0x22f   :  { %2358 = vsyncpa [#allocation5 + $0x1], 1 }
 0x230   :  { %2359 = vsyncpa [#allocation8], 1 }
 0x231   :  { %2360 = vsyncpa [#allocation6], 1 }
 0x232   :  { %2362 = vsyncpa [#allocation6 + $0x1], 1 }

</bundles_post_ra>
